<compile_context>
chip_gen: v5e
topology: v5e:2x2
jax: 0.10.0
libtpu: 0.0.40
codegen_flags: <defaults>
</compile_context>

<pallas_src>
import functools

import jax
import jax.numpy as jnp
from jax import lax
from jax.experimental import pallas as pl
from jax.experimental.pallas import tpu as pltpu


# ----------------------------------------------------------------------------
# The fused Pallas kernel
# ----------------------------------------------------------------------------
def _fused_cnn_kernel(x_ref, t1_ref, c1b_ref, t2_ref, c2b_ref,
                      fw1_ref, fb1_ref, fw2_ref, fb2_ref, fw3_ref, fb3_ref,
                      o_ref, pool1_ref, feat_ref,
                      *, n, h_in, w_in, c_in, k1, c1, p1, k2, c2, p2):
    f32 = jnp.float32
    bf16 = jnp.bfloat16

    ho1, wo1 = h_in - k1 + 1, w_in - k1 + 1
    hp1, wp1 = ho1 // p1, wo1 // p1
    ho2, wo2 = hp1 - k2 + 1, wp1 - k2 + 1
    hp2, wp2 = ho2 // p2, wo2 // p2

    # ---- conv1 + ReLU: rows (n*h_in, w_in*c_in) -> (n*ho1, wo1*c1) ---------
    # For each kh, a sublane-shifted slice of the row-major NHWC image hits
    # the MXU against a block-Toeplitz weight matrix (kw folded into it).
    x = x_ref[...]                                            # f32
    acc1 = None
    for kh in range(k1):
        xs = jnp.concatenate(
            [x[b * h_in + kh: b * h_in + kh + ho1, :] for b in range(n)],
            axis=0).astype(bf16)                              # (n*ho1, w_in*c_in)
        part = jnp.dot(xs, t1_ref[kh], preferred_element_type=f32)
        acc1 = part if acc1 is None else acc1 + part
    a1 = jnp.maximum(acc1 + c1b_ref[...], 0.0)                # (n*ho1, wo1*c1)

    # ---- pool1: p1 x p1 max, VPU elementwise over shifted views ------------
    for b in range(n):
        for hp in range(hp1):
            r0 = b * ho1 + p1 * hp
            r = a1[r0:r0 + 1, :]
            for dh in range(1, p1):
                r = jnp.maximum(r, a1[r0 + dh:r0 + dh + 1, :])
            blocks = []
            for wp in range(wp1):
                blk = r[:, (p1 * wp) * c1:(p1 * wp) * c1 + c1]
                for dw in range(1, p1):
                    c0 = (p1 * wp + dw) * c1
                    blk = jnp.maximum(blk, r[:, c0:c0 + c1])
                blocks.append(blk)
            pool1_ref[b * hp1 + hp: b * hp1 + hp + 1, :] = (
                jnp.concatenate(blocks, axis=1))              # (1, wp1*c1)

    # ---- conv2 + ReLU: (n*hp1, wp1*c1) -> (n*ho2, wo2*c2) ------------------
    acc2 = None
    for kh in range(k2):
        xs = jnp.concatenate(
            [pool1_ref[b * hp1 + kh: b * hp1 + kh + ho2, :] for b in range(n)],
            axis=0).astype(bf16)                              # (n*ho2, wp1*c1)
        part = jnp.dot(xs, t2_ref[kh], preferred_element_type=f32)
        acc2 = part if acc2 is None else acc2 + part
    a2 = jnp.maximum(acc2 + c2b_ref[...], 0.0)                # (n*ho2, wo2*c2)

    # ---- pool2 + flatten (h, w, c order) -> feat_ref (n, hp2*wp2*c2) -------
    for b in range(n):
        for hp in range(hp2):
            r0 = b * ho2 + p2 * hp
            r = a2[r0:r0 + 1, :]
            for dh in range(1, p2):
                r = jnp.maximum(r, a2[r0 + dh:r0 + dh + 1, :])
            for wp in range(wp2):
                blk = r[:, (p2 * wp) * c2:(p2 * wp) * c2 + c2]
                for dw in range(1, p2):
                    c0 = (p2 * wp + dw) * c2
                    blk = jnp.maximum(blk, r[:, c0:c0 + c2])
                f0 = (hp * wp2 + wp) * c2
                feat_ref[b:b + 1, f0:f0 + c2] = blk

    # ---- fc1 -> fc2 -> fc3 (bf16 MXU, f32 accum, lane-dense padded out) ----
    feat = feat_ref[...].astype(bf16)                         # (n, l0)
    h1 = jnp.maximum(
        jnp.dot(feat, fw1_ref[...], preferred_element_type=f32) + fb1_ref[...], 0.0)
    h2 = jnp.maximum(
        jnp.dot(h1.astype(bf16), fw2_ref[...], preferred_element_type=f32) + fb2_ref[...], 0.0)
    logits = (jnp.dot(h2.astype(bf16), fw3_ref[...], preferred_element_type=f32)
              + fb3_ref[...])
    o_ref[...] = logits.astype(o_ref.dtype)                   # (n, 128) lane-dense


# ----------------------------------------------------------------------------
# One-time parameter preparation (weight-only work, done once outside the
# forward hot path)
# ----------------------------------------------------------------------------
def _row_toeplitz(w, in_w):
    """w: (c_out, c_in, k, k) torch layout -> (k, in_w*c_in, out_w*c_out)."""
    c_out, c_in, k, _ = w.shape
    out_w = in_w - k + 1
    t = jnp.zeros((k, in_w * c_in, out_w * c_out), jnp.float32)
    for kh in range(k):
        for kw in range(k):
            blk = jnp.transpose(w[:, :, kh, kw])              # (c_in, c_out)
            for wo in range(out_w):
                wi = wo + kw
                t = t.at[kh, wi * c_in:(wi + 1) * c_in,
                         wo * c_out:(wo + 1) * c_out].set(blk)
    return t


def init_params(key, nodes):
    c1_in, c1_out, k1 = nodes["conv1"]
    c2_in, c2_out, k2 = nodes["conv2"]
    l0, l1, l2, l3 = nodes["layout"]

    def uniform(key, shape, fan_in):
        bound = 1.0 / jnp.sqrt(jnp.float32(fan_in))
        return jax.random.uniform(key, shape, jnp.float32, -bound, bound)

    ks = jax.random.split(key, 10)
    return {
        "conv1_w": uniform(ks[0], (c1_out, c1_in, k1, k1), c1_in * k1 * k1),
        "conv1_b": uniform(ks[1], (c1_out,), c1_in * k1 * k1),
        "conv2_w": uniform(ks[2], (c2_out, c2_in, k2, k2), c2_in * k2 * k2),
        "conv2_b": uniform(ks[3], (c2_out,), c2_in * k2 * k2),
        "w1": uniform(ks[4], (l1, l0), l0),
        "b1": uniform(ks[5], (l1,), l0),
        "w2": uniform(ks[6], (l2, l1), l1),
        "b2": uniform(ks[7], (l2,), l1),
        "w3": uniform(ks[8], (l3, l2), l2),
        "b3": uniform(ks[9], (l3,), l2),
    }


def prepare_plan(nodes, params, input_hw):
    c1_in, c1_out, k1 = nodes["conv1"]
    c2_in, c2_out, k2 = nodes["conv2"]
    p1, p2 = nodes["pool1"], nodes["pool2"]
    l0, l1, l2, l3 = nodes["layout"]
    h_in, w_in = input_hw

    ho1, wo1 = h_in - k1 + 1, w_in - k1 + 1
    hp1, wp1 = ho1 // p1, wo1 // p1
    ho2, wo2 = hp1 - k2 + 1, wp1 - k2 + 1
    hp2, wp2 = ho2 // p2, wo2 // p2
    assert c2_in == c1_out
    assert c2_out * hp2 * wp2 == l0

    bf16, f32 = jnp.bfloat16, jnp.float32

    # Convs as row-Toeplitz matmul weights (bf16 for the MXU), biases tiled
    # to the (wo*c_out) lane layout.
    t1 = _row_toeplitz(params["conv1_w"], w_in).astype(bf16)
    t2 = _row_toeplitz(params["conv2_w"], wp1).astype(bf16)
    c1b = jnp.tile(params["conv1_b"], wo1).reshape(1, -1).astype(f32)
    c2b = jnp.tile(params["conv2_b"], wo2).reshape(1, -1).astype(f32)

    # Absorb torch's NCHW flatten into a permutation of fc1's input rows so
    # the kernel can keep activations in (h, w, c) order.
    perm = []
    for hh in range(hp2):
        for ww in range(wp2):
            for cc in range(c2_out):
                perm.append(cc * hp2 * wp2 + hh * wp2 + ww)
    fw1 = jnp.transpose(params["w1"])[jnp.array(perm), :].astype(bf16)   # (l0, l1)

    # Zero-pad fc3 to a lane-dense (multiple of 128) output width.
    out_pad = max(128, -(-l3 // 128) * 128)
    fw3 = (jnp.zeros((l2, out_pad), f32)
           .at[:, :l3].set(jnp.transpose(params["w3"])).astype(bf16))
    fb3 = jnp.zeros((1, out_pad), f32).at[:, :l3].set(params["b3"])

    return {
        "dims": dict(h_in=h_in, w_in=w_in, c_in=c1_in, k1=k1, c1=c1_out, p1=p1,
                     k2=k2, c2=c2_out, p2=p2, hp1=hp1, wp1=wp1, l0=l0, l3=l3,
                     out_pad=out_pad),
        "t1": t1, "c1b": c1b, "t2": t2, "c2b": c2b,
        "fw1": fw1, "fb1": params["b1"].reshape(1, -1).astype(f32),
        "fw2": jnp.transpose(params["w2"]).astype(bf16),
        "fb2": params["b2"].reshape(1, -1).astype(f32),
        "fw3": fw3, "fb3": fb3,
    }


# ----------------------------------------------------------------------------
# Forward: one transpose/reshape of x, ONE pallas_call, one slice.
# ----------------------------------------------------------------------------
def cnn_forward(plan, x_nchw):
    d = plan["dims"]
    n = x_nchw.shape[0]
    # NCHW -> NHWC rows (n*H, W*Cin): the only activation-path XLA glue.
    xrows = jnp.transpose(x_nchw.astype(jnp.float32), (0, 2, 3, 1)).reshape(
        n * d["h_in"], d["w_in"] * d["c_in"])

    kernel = functools.partial(
        _fused_cnn_kernel, n=n, h_in=d["h_in"], w_in=d["w_in"], c_in=d["c_in"],
        k1=d["k1"], c1=d["c1"], p1=d["p1"], k2=d["k2"], c2=d["c2"], p2=d["p2"])

    vmem = pl.BlockSpec(memory_space=pltpu.MemorySpace.VMEM)
    out = pl.pallas_call(
        kernel,
        out_shape=jax.ShapeDtypeStruct((n, d["out_pad"]), jnp.float32),
        in_specs=[vmem] * 11,
        out_specs=vmem,
        scratch_shapes=[
            pltpu.VMEM((n * d["hp1"], d["wp1"] * d["c1"]), jnp.float32),  # pooled1
            pltpu.VMEM((n, d["l0"]), jnp.float32),                         # flat feats
        ],
        # TODO(synk): at larger batch/spatial sizes add a batch grid with
        # dimension_semantics=("parallel",) so v7x's two TensorCores split work.
    )(xrows, plan["t1"], plan["c1b"], plan["t2"], plan["c2b"],
      plan["fw1"], plan["fb1"], plan["fw2"], plan["fb2"],
      plan["fw3"], plan["fb3"])
    return out[:, :d["l3"]]


# ----------------------------------------------------------------------------
# Pure-JAX reference (mirrors the PyTorch forward exactly)
# ----------------------------------------------------------------------------
def reference_forward(nodes, params, x):
    def conv(x, w, b):
        y = lax.conv_general_dilated(x, w, (1, 1), "VALID",
                                     dimension_numbers=("NCHW", "OIHW", "NCHW"))
        return y + b[None, :, None, None]

    def pool(x, p):
        return lax.reduce_window(x, -jnp.inf, lax.max,
                                 (1, 1, p, p), (1, 1, p, p), "VALID")

    x = pool(jnp.maximum(conv(x, params["conv1_w"], params["conv1_b"]), 0.0),
             nodes["pool1"])
    x = pool(jnp.maximum(conv(x, params["conv2_w"], params["conv2_b"]), 0.0),
             nodes["pool2"])
    x = x.reshape(x.shape[0], nodes["layout"][0])
    x = jnp.maximum(x @ params["w1"].T + params["b1"], 0.0)
    x = jnp.maximum(x @ params["w2"].T + params["b2"], 0.0)
    return x @ params["w3"].T + params["b3"]


if __name__ == "__main__":
    # input (2, 4, 16, 16) NCHW
    #   conv1: 4 -> 8, k=3   => 14x14 ; pool1=2 => 7x7
    #   conv2: 8 -> 8, k=2   => 6x6   ; pool2=2 => 3x3
    #   layout[0] = 8 * 3 * 3 = 72 ; MLP: 72 -> 32 -> 16 -> 10
    nodes = {
        "conv1": [4, 8, 3],
        "pool1": 2,
        "conv2": [8, 8, 2],
        "pool2": 2,
        "layout": [72, 32, 16, 10],
    }

    key = jax.random.PRNGKey(0)
    pkey, xkey = jax.random.split(key)
    params = init_params(pkey, nodes)
    x = jax.random.normal(xkey, (2, 4, 16, 16), jnp.float32)

    plan = prepare_plan(nodes, params, input_hw=(16, 16))
    out = jax.block_until_ready(cnn_forward(plan, x))

    assert out.shape == (2, nodes["layout"][3]), out.shape
    assert bool(jnp.all(jnp.isfinite(out)))
    ref = reference_forward(nodes, params, x)
    assert bool(jnp.allclose(out, ref, rtol=8e-2, atol=8e-2)), (
        float(jnp.max(jnp.abs(out - ref))))
    print("KERNEL_OK")
</pallas_src>

<mosaic_0001>
module attributes {stable_mosaic.version = 11 : i64} {
  func.func @_fused_cnn_kernel(%arg0: memref<32x64xf32, #tpu.memory_space<vmem>>, %arg1: memref<3x64x112xbf16, #tpu.memory_space<vmem>>, %arg2: memref<1x112xf32, #tpu.memory_space<vmem>>, %arg3: memref<2x56x48xbf16, #tpu.memory_space<vmem>>, %arg4: memref<1x48xf32, #tpu.memory_space<vmem>>, %arg5: memref<72x32xbf16, #tpu.memory_space<vmem>>, %arg6: memref<1x32xf32, #tpu.memory_space<vmem>>, %arg7: memref<32x16xbf16, #tpu.memory_space<vmem>>, %arg8: memref<1x16xf32, #tpu.memory_space<vmem>>, %arg9: memref<16x128xbf16, #tpu.memory_space<vmem>>, %arg10: memref<1x128xf32, #tpu.memory_space<vmem>>, %arg11: memref<2x128xf32, #tpu.memory_space<vmem>>, %arg12: memref<14x56xf32, #tpu.memory_space<vmem>>, %arg13: memref<2x72xf32, #tpu.memory_space<vmem>>) attributes {dimension_semantics = [], scalar_prefetch = 0 : i64, scratch_operands = 2 : i64, tpu.core_type = #tpu.core_type<tc>} {
    %c0 = arith.constant 0 : index
    %c0_0 = arith.constant 0 : index
    %0 = vector.load %arg0[%c0, %c0_0] : memref<32x64xf32, #tpu.memory_space<vmem>>, vector<32x64xf32>
    %1 = vector.extract_strided_slice %0 {offsets = [0, 0], sizes = [14, 64], strides = [1, 1]} : vector<32x64xf32> to vector<14x64xf32>
    %2 = vector.extract_strided_slice %0 {offsets = [16, 0], sizes = [14, 64], strides = [1, 1]} : vector<32x64xf32> to vector<14x64xf32>
    %3 = tpu.concatenate %1, %2 in 0 : vector<14x64xf32>, vector<14x64xf32> -> vector<28x64xf32>
    %4 = arith.truncf %3 : vector<28x64xf32> to vector<28x64xbf16>
    %c0_1 = arith.constant 0 : index
    %c0_2 = arith.constant 0 : index
    %c0_3 = arith.constant 0 : index
    %5 = vector.load %arg1[%c0_1, %c0_2, %c0_3] : memref<3x64x112xbf16, #tpu.memory_space<vmem>>, vector<1x64x112xbf16>
    %6 = vector.shape_cast %5 : vector<1x64x112xbf16> to vector<64x112xbf16>
    %cst = arith.constant dense<0.000000e+00> : vector<28x112xf32>
    %7 = tpu.matmul %4, %6, %cst {dimension_numbers = #tpu.dot_dimension_numbers<[1], [0], [0], [1], [0, 0, 1, 1], [], []>} : vector<28x64xbf16>, vector<64x112xbf16>, vector<28x112xf32> -> vector<28x112xf32>
    %8 = vector.extract_strided_slice %0 {offsets = [1, 0], sizes = [14, 64], strides = [1, 1]} : vector<32x64xf32> to vector<14x64xf32>
    %9 = vector.extract_strided_slice %0 {offsets = [17, 0], sizes = [14, 64], strides = [1, 1]} : vector<32x64xf32> to vector<14x64xf32>
    %10 = tpu.concatenate %8, %9 in 0 : vector<14x64xf32>, vector<14x64xf32> -> vector<28x64xf32>
    %11 = arith.truncf %10 : vector<28x64xf32> to vector<28x64xbf16>
    %c1 = arith.constant 1 : index
    %c0_4 = arith.constant 0 : index
    %c0_5 = arith.constant 0 : index
    %12 = vector.load %arg1[%c1, %c0_4, %c0_5] : memref<3x64x112xbf16, #tpu.memory_space<vmem>>, vector<1x64x112xbf16>
    %13 = vector.shape_cast %12 : vector<1x64x112xbf16> to vector<64x112xbf16>
    %cst_6 = arith.constant dense<0.000000e+00> : vector<28x112xf32>
    %14 = tpu.matmul %11, %13, %cst_6 {dimension_numbers = #tpu.dot_dimension_numbers<[1], [0], [0], [1], [0, 0, 1, 1], [], []>} : vector<28x64xbf16>, vector<64x112xbf16>, vector<28x112xf32> -> vector<28x112xf32>
    %15 = arith.addf %7, %14 : vector<28x112xf32>
    %16 = vector.extract_strided_slice %0 {offsets = [2, 0], sizes = [14, 64], strides = [1, 1]} : vector<32x64xf32> to vector<14x64xf32>
    %17 = vector.extract_strided_slice %0 {offsets = [18, 0], sizes = [14, 64], strides = [1, 1]} : vector<32x64xf32> to vector<14x64xf32>
    %18 = tpu.concatenate %16, %17 in 0 : vector<14x64xf32>, vector<14x64xf32> -> vector<28x64xf32>
    %19 = arith.truncf %18 : vector<28x64xf32> to vector<28x64xbf16>
    %c2 = arith.constant 2 : index
    %c0_7 = arith.constant 0 : index
    %c0_8 = arith.constant 0 : index
    %20 = vector.load %arg1[%c2, %c0_7, %c0_8] : memref<3x64x112xbf16, #tpu.memory_space<vmem>>, vector<1x64x112xbf16>
    %21 = vector.shape_cast %20 : vector<1x64x112xbf16> to vector<64x112xbf16>
    %cst_9 = arith.constant dense<0.000000e+00> : vector<28x112xf32>
    %22 = tpu.matmul %19, %21, %cst_9 {dimension_numbers = #tpu.dot_dimension_numbers<[1], [0], [0], [1], [0, 0, 1, 1], [], []>} : vector<28x64xbf16>, vector<64x112xbf16>, vector<28x112xf32> -> vector<28x112xf32>
    %23 = arith.addf %15, %22 : vector<28x112xf32>
    %c0_10 = arith.constant 0 : index
    %c0_11 = arith.constant 0 : index
    %24 = vector.load %arg2[%c0_10, %c0_11] : memref<1x112xf32, #tpu.memory_space<vmem>>, vector<1x112xf32>
    %25 = vector.broadcast %24 : vector<1x112xf32> to vector<28x112xf32>
    %26 = arith.addf %23, %25 : vector<28x112xf32>
    %cst_12 = arith.constant 0.000000e+00 : f32
    %27 = vector.broadcast %cst_12 : f32 to vector<28x112xf32>
    %28 = arith.maximumf %26, %27 : vector<28x112xf32>
    %29 = vector.extract_strided_slice %28 {offsets = [0, 0], sizes = [1, 112], strides = [1, 1]} : vector<28x112xf32> to vector<1x112xf32>
    %30 = vector.extract_strided_slice %28 {offsets = [1, 0], sizes = [1, 112], strides = [1, 1]} : vector<28x112xf32> to vector<1x112xf32>
    %31 = arith.maximumf %29, %30 : vector<1x112xf32>
    %32 = vector.extract_strided_slice %31 {offsets = [0, 0], sizes = [1, 8], strides = [1, 1]} : vector<1x112xf32> to vector<1x8xf32>
    %33 = vector.extract_strided_slice %31 {offsets = [0, 8], sizes = [1, 8], strides = [1, 1]} : vector<1x112xf32> to vector<1x8xf32>
    %34 = arith.maximumf %32, %33 : vector<1x8xf32>
    %35 = vector.extract_strided_slice %31 {offsets = [0, 16], sizes = [1, 8], strides = [1, 1]} : vector<1x112xf32> to vector<1x8xf32>
    %36 = vector.extract_strided_slice %31 {offsets = [0, 24], sizes = [1, 8], strides = [1, 1]} : vector<1x112xf32> to vector<1x8xf32>
    %37 = arith.maximumf %35, %36 : vector<1x8xf32>
    %38 = vector.extract_strided_slice %31 {offsets = [0, 32], sizes = [1, 8], strides = [1, 1]} : vector<1x112xf32> to vector<1x8xf32>
    %39 = vector.extract_strided_slice %31 {offsets = [0, 40], sizes = [1, 8], strides = [1, 1]} : vector<1x112xf32> to vector<1x8xf32>
    %40 = arith.maximumf %38, %39 : vector<1x8xf32>
    %41 = vector.extract_strided_slice %31 {offsets = [0, 48], sizes = [1, 8], strides = [1, 1]} : vector<1x112xf32> to vector<1x8xf32>
    %42 = vector.extract_strided_slice %31 {offsets = [0, 56], sizes = [1, 8], strides = [1, 1]} : vector<1x112xf32> to vector<1x8xf32>
    %43 = arith.maximumf %41, %42 : vector<1x8xf32>
    %44 = vector.extract_strided_slice %31 {offsets = [0, 64], sizes = [1, 8], strides = [1, 1]} : vector<1x112xf32> to vector<1x8xf32>
    %45 = vector.extract_strided_slice %31 {offsets = [0, 72], sizes = [1, 8], strides = [1, 1]} : vector<1x112xf32> to vector<1x8xf32>
    %46 = arith.maximumf %44, %45 : vector<1x8xf32>
    %47 = vector.extract_strided_slice %31 {offsets = [0, 80], sizes = [1, 8], strides = [1, 1]} : vector<1x112xf32> to vector<1x8xf32>
    %48 = vector.extract_strided_slice %31 {offsets = [0, 88], sizes = [1, 8], strides = [1, 1]} : vector<1x112xf32> to vector<1x8xf32>
    %49 = arith.maximumf %47, %48 : vector<1x8xf32>
    %50 = vector.extract_strided_slice %31 {offsets = [0, 96], sizes = [1, 8], strides = [1, 1]} : vector<1x112xf32> to vector<1x8xf32>
    %51 = vector.extract_strided_slice %31 {offsets = [0, 104], sizes = [1, 8], strides = [1, 1]} : vector<1x112xf32> to vector<1x8xf32>
    %52 = arith.maximumf %50, %51 : vector<1x8xf32>
    %53 = tpu.concatenate %34, %37, %40, %43, %46, %49, %52 in 1 : vector<1x8xf32>, vector<1x8xf32>, vector<1x8xf32>, vector<1x8xf32>, vector<1x8xf32>, vector<1x8xf32>, vector<1x8xf32> -> vector<1x56xf32>
    %c0_13 = arith.constant 0 : index
    %c0_14 = arith.constant 0 : index
    %54 = vector.load %arg12[%c0_13, %c0_14] : memref<14x56xf32, #tpu.memory_space<vmem>>, vector<1x56xf32>
    tpu.vector_store %arg12[%c0_13, %c0_14], %53 {strides = array<i32>} : memref<14x56xf32, #tpu.memory_space<vmem>>, vector<1x56xf32>,
    %55 = vector.extract_strided_slice %28 {offsets = [2, 0], sizes = [1, 112], strides = [1, 1]} : vector<28x112xf32> to vector<1x112xf32>
    %56 = vector.extract_strided_slice %28 {offsets = [3, 0], sizes = [1, 112], strides = [1, 1]} : vector<28x112xf32> to vector<1x112xf32>
    %57 = arith.maximumf %55, %56 : vector<1x112xf32>
    %58 = vector.extract_strided_slice %57 {offsets = [0, 0], sizes = [1, 8], strides = [1, 1]} : vector<1x112xf32> to vector<1x8xf32>
    %59 = vector.extract_strided_slice %57 {offsets = [0, 8], sizes = [1, 8], strides = [1, 1]} : vector<1x112xf32> to vector<1x8xf32>
    %60 = arith.maximumf %58, %59 : vector<1x8xf32>
    %61 = vector.extract_strided_slice %57 {offsets = [0, 16], sizes = [1, 8], strides = [1, 1]} : vector<1x112xf32> to vector<1x8xf32>
    %62 = vector.extract_strided_slice %57 {offsets = [0, 24], sizes = [1, 8], strides = [1, 1]} : vector<1x112xf32> to vector<1x8xf32>
    %63 = arith.maximumf %61, %62 : vector<1x8xf32>
    %64 = vector.extract_strided_slice %57 {offsets = [0, 32], sizes = [1, 8], strides = [1, 1]} : vector<1x112xf32> to vector<1x8xf32>
    %65 = vector.extract_strided_slice %57 {offsets = [0, 40], sizes = [1, 8], strides = [1, 1]} : vector<1x112xf32> to vector<1x8xf32>
    %66 = arith.maximumf %64, %65 : vector<1x8xf32>
    %67 = vector.extract_strided_slice %57 {offsets = [0, 48], sizes = [1, 8], strides = [1, 1]} : vector<1x112xf32> to vector<1x8xf32>
    %68 = vector.extract_strided_slice %57 {offsets = [0, 56], sizes = [1, 8], strides = [1, 1]} : vector<1x112xf32> to vector<1x8xf32>
    %69 = arith.maximumf %67, %68 : vector<1x8xf32>
    %70 = vector.extract_strided_slice %57 {offsets = [0, 64], sizes = [1, 8], strides = [1, 1]} : vector<1x112xf32> to vector<1x8xf32>
    %71 = vector.extract_strided_slice %57 {offsets = [0, 72], sizes = [1, 8], strides = [1, 1]} : vector<1x112xf32> to vector<1x8xf32>
    %72 = arith.maximumf %70, %71 : vector<1x8xf32>
    %73 = vector.extract_strided_slice %57 {offsets = [0, 80], sizes = [1, 8], strides = [1, 1]} : vector<1x112xf32> to vector<1x8xf32>
    %74 = vector.extract_strided_slice %57 {offsets = [0, 88], sizes = [1, 8], strides = [1, 1]} : vector<1x112xf32> to vector<1x8xf32>
    %75 = arith.maximumf %73, %74 : vector<1x8xf32>
    %76 = vector.extract_strided_slice %57 {offsets = [0, 96], sizes = [1, 8], strides = [1, 1]} : vector<1x112xf32> to vector<1x8xf32>
    %77 = vector.extract_strided_slice %57 {offsets = [0, 104], sizes = [1, 8], strides = [1, 1]} : vector<1x112xf32> to vector<1x8xf32>
    %78 = arith.maximumf %76, %77 : vector<1x8xf32>
    %79 = tpu.concatenate %60, %63, %66, %69, %72, %75, %78 in 1 : vector<1x8xf32>, vector<1x8xf32>, vector<1x8xf32>, vector<1x8xf32>, vector<1x8xf32>, vector<1x8xf32>, vector<1x8xf32> -> vector<1x56xf32>
    %c1_15 = arith.constant 1 : index
    %c0_16 = arith.constant 0 : index
    %80 = vector.load %arg12[%c1_15, %c0_16] : memref<14x56xf32, #tpu.memory_space<vmem>>, vector<1x56xf32>
    tpu.vector_store %arg12[%c1_15, %c0_16], %79 {strides = array<i32>} : memref<14x56xf32, #tpu.memory_space<vmem>>, vector<1x56xf32>,
    %81 = vector.extract_strided_slice %28 {offsets = [4, 0], sizes = [1, 112], strides = [1, 1]} : vector<28x112xf32> to vector<1x112xf32>
    %82 = vector.extract_strided_slice %28 {offsets = [5, 0], sizes = [1, 112], strides = [1, 1]} : vector<28x112xf32> to vector<1x112xf32>
    %83 = arith.maximumf %81, %82 : vector<1x112xf32>
    %84 = vector.extract_strided_slice %83 {offsets = [0, 0], sizes = [1, 8], strides = [1, 1]} : vector<1x112xf32> to vector<1x8xf32>
    %85 = vector.extract_strided_slice %83 {offsets = [0, 8], sizes = [1, 8], strides = [1, 1]} : vector<1x112xf32> to vector<1x8xf32>
    %86 = arith.maximumf %84, %85 : vector<1x8xf32>
    %87 = vector.extract_strided_slice %83 {offsets = [0, 16], sizes = [1, 8], strides = [1, 1]} : vector<1x112xf32> to vector<1x8xf32>
    %88 = vector.extract_strided_slice %83 {offsets = [0, 24], sizes = [1, 8], strides = [1, 1]} : vector<1x112xf32> to vector<1x8xf32>
    %89 = arith.maximumf %87, %88 : vector<1x8xf32>
    %90 = vector.extract_strided_slice %83 {offsets = [0, 32], sizes = [1, 8], strides = [1, 1]} : vector<1x112xf32> to vector<1x8xf32>
    %91 = vector.extract_strided_slice %83 {offsets = [0, 40], sizes = [1, 8], strides = [1, 1]} : vector<1x112xf32> to vector<1x8xf32>
    %92 = arith.maximumf %90, %91 : vector<1x8xf32>
    %93 = vector.extract_strided_slice %83 {offsets = [0, 48], sizes = [1, 8], strides = [1, 1]} : vector<1x112xf32> to vector<1x8xf32>
    %94 = vector.extract_strided_slice %83 {offsets = [0, 56], sizes = [1, 8], strides = [1, 1]} : vector<1x112xf32> to vector<1x8xf32>
    %95 = arith.maximumf %93, %94 : vector<1x8xf32>
    %96 = vector.extract_strided_slice %83 {offsets = [0, 64], sizes = [1, 8], strides = [1, 1]} : vector<1x112xf32> to vector<1x8xf32>
    %97 = vector.extract_strided_slice %83 {offsets = [0, 72], sizes = [1, 8], strides = [1, 1]} : vector<1x112xf32> to vector<1x8xf32>
    %98 = arith.maximumf %96, %97 : vector<1x8xf32>
    %99 = vector.extract_strided_slice %83 {offsets = [0, 80], sizes = [1, 8], strides = [1, 1]} : vector<1x112xf32> to vector<1x8xf32>
    %100 = vector.extract_strided_slice %83 {offsets = [0, 88], sizes = [1, 8], strides = [1, 1]} : vector<1x112xf32> to vector<1x8xf32>
    %101 = arith.maximumf %99, %100 : vector<1x8xf32>
    %102 = vector.extract_strided_slice %83 {offsets = [0, 96], sizes = [1, 8], strides = [1, 1]} : vector<1x112xf32> to vector<1x8xf32>
    %103 = vector.extract_strided_slice %83 {offsets = [0, 104], sizes = [1, 8], strides = [1, 1]} : vector<1x112xf32> to vector<1x8xf32>
    %104 = arith.maximumf %102, %103 : vector<1x8xf32>
    %105 = tpu.concatenate %86, %89, %92, %95, %98, %101, %104 in 1 : vector<1x8xf32>, vector<1x8xf32>, vector<1x8xf32>, vector<1x8xf32>, vector<1x8xf32>, vector<1x8xf32>, vector<1x8xf32> -> vector<1x56xf32>
    %c2_17 = arith.constant 2 : index
    %c0_18 = arith.constant 0 : index
    %106 = vector.load %arg12[%c2_17, %c0_18] : memref<14x56xf32, #tpu.memory_space<vmem>>, vector<1x56xf32>
    tpu.vector_store %arg12[%c2_17, %c0_18], %105 {strides = array<i32>} : memref<14x56xf32, #tpu.memory_space<vmem>>, vector<1x56xf32>,
    %107 = vector.extract_strided_slice %28 {offsets = [6, 0], sizes = [1, 112], strides = [1, 1]} : vector<28x112xf32> to vector<1x112xf32>
    %108 = vector.extract_strided_slice %28 {offsets = [7, 0], sizes = [1, 112], strides = [1, 1]} : vector<28x112xf32> to vector<1x112xf32>
    %109 = arith.maximumf %107, %108 : vector<1x112xf32>
    %110 = vector.extract_strided_slice %109 {offsets = [0, 0], sizes = [1, 8], strides = [1, 1]} : vector<1x112xf32> to vector<1x8xf32>
    %111 = vector.extract_strided_slice %109 {offsets = [0, 8], sizes = [1, 8], strides = [1, 1]} : vector<1x112xf32> to vector<1x8xf32>
    %112 = arith.maximumf %110, %111 : vector<1x8xf32>
    %113 = vector.extract_strided_slice %109 {offsets = [0, 16], sizes = [1, 8], strides = [1, 1]} : vector<1x112xf32> to vector<1x8xf32>
    %114 = vector.extract_strided_slice %109 {offsets = [0, 24], sizes = [1, 8], strides = [1, 1]} : vector<1x112xf32> to vector<1x8xf32>
    %115 = arith.maximumf %113, %114 : vector<1x8xf32>
    %116 = vector.extract_strided_slice %109 {offsets = [0, 32], sizes = [1, 8], strides = [1, 1]} : vector<1x112xf32> to vector<1x8xf32>
    %117 = vector.extract_strided_slice %109 {offsets = [0, 40], sizes = [1, 8], strides = [1, 1]} : vector<1x112xf32> to vector<1x8xf32>
    %118 = arith.maximumf %116, %117 : vector<1x8xf32>
    %119 = vector.extract_strided_slice %109 {offsets = [0, 48], sizes = [1, 8], strides = [1, 1]} : vector<1x112xf32> to vector<1x8xf32>
    %120 = vector.extract_strided_slice %109 {offsets = [0, 56], sizes = [1, 8], strides = [1, 1]} : vector<1x112xf32> to vector<1x8xf32>
    %121 = arith.maximumf %119, %120 : vector<1x8xf32>
    %122 = vector.extract_strided_slice %109 {offsets = [0, 64], sizes = [1, 8], strides = [1, 1]} : vector<1x112xf32> to vector<1x8xf32>
    %123 = vector.extract_strided_slice %109 {offsets = [0, 72], sizes = [1, 8], strides = [1, 1]} : vector<1x112xf32> to vector<1x8xf32>
    %124 = arith.maximumf %122, %123 : vector<1x8xf32>
    %125 = vector.extract_strided_slice %109 {offsets = [0, 80], sizes = [1, 8], strides = [1, 1]} : vector<1x112xf32> to vector<1x8xf32>
    %126 = vector.extract_strided_slice %109 {offsets = [0, 88], sizes = [1, 8], strides = [1, 1]} : vector<1x112xf32> to vector<1x8xf32>
    %127 = arith.maximumf %125, %126 : vector<1x8xf32>
    %128 = vector.extract_strided_slice %109 {offsets = [0, 96], sizes = [1, 8], strides = [1, 1]} : vector<1x112xf32> to vector<1x8xf32>
    %129 = vector.extract_strided_slice %109 {offsets = [0, 104], sizes = [1, 8], strides = [1, 1]} : vector<1x112xf32> to vector<1x8xf32>
    %130 = arith.maximumf %128, %129 : vector<1x8xf32>
    %131 = tpu.concatenate %112, %115, %118, %121, %124, %127, %130 in 1 : vector<1x8xf32>, vector<1x8xf32>, vector<1x8xf32>, vector<1x8xf32>, vector<1x8xf32>, vector<1x8xf32>, vector<1x8xf32> -> vector<1x56xf32>
    %c3 = arith.constant 3 : index
    %c0_19 = arith.constant 0 : index
    %132 = vector.load %arg12[%c3, %c0_19] : memref<14x56xf32, #tpu.memory_space<vmem>>, vector<1x56xf32>
    tpu.vector_store %arg12[%c3, %c0_19], %131 {strides = array<i32>} : memref<14x56xf32, #tpu.memory_space<vmem>>, vector<1x56xf32>,
    %133 = vector.extract_strided_slice %28 {offsets = [8, 0], sizes = [1, 112], strides = [1, 1]} : vector<28x112xf32> to vector<1x112xf32>
    %134 = vector.extract_strided_slice %28 {offsets = [9, 0], sizes = [1, 112], strides = [1, 1]} : vector<28x112xf32> to vector<1x112xf32>
    %135 = arith.maximumf %133, %134 : vector<1x112xf32>
    %136 = vector.extract_strided_slice %135 {offsets = [0, 0], sizes = [1, 8], strides = [1, 1]} : vector<1x112xf32> to vector<1x8xf32>
    %137 = vector.extract_strided_slice %135 {offsets = [0, 8], sizes = [1, 8], strides = [1, 1]} : vector<1x112xf32> to vector<1x8xf32>
    %138 = arith.maximumf %136, %137 : vector<1x8xf32>
    %139 = vector.extract_strided_slice %135 {offsets = [0, 16], sizes = [1, 8], strides = [1, 1]} : vector<1x112xf32> to vector<1x8xf32>
    %140 = vector.extract_strided_slice %135 {offsets = [0, 24], sizes = [1, 8], strides = [1, 1]} : vector<1x112xf32> to vector<1x8xf32>
    %141 = arith.maximumf %139, %140 : vector<1x8xf32>
    %142 = vector.extract_strided_slice %135 {offsets = [0, 32], sizes = [1, 8], strides = [1, 1]} : vector<1x112xf32> to vector<1x8xf32>
    %143 = vector.extract_strided_slice %135 {offsets = [0, 40], sizes = [1, 8], strides = [1, 1]} : vector<1x112xf32> to vector<1x8xf32>
    %144 = arith.maximumf %142, %143 : vector<1x8xf32>
    %145 = vector.extract_strided_slice %135 {offsets = [0, 48], sizes = [1, 8], strides = [1, 1]} : vector<1x112xf32> to vector<1x8xf32>
    %146 = vector.extract_strided_slice %135 {offsets = [0, 56], sizes = [1, 8], strides = [1, 1]} : vector<1x112xf32> to vector<1x8xf32>
    %147 = arith.maximumf %145, %146 : vector<1x8xf32>
    %148 = vector.extract_strided_slice %135 {offsets = [0, 64], sizes = [1, 8], strides = [1, 1]} : vector<1x112xf32> to vector<1x8xf32>
    %149 = vector.extract_strided_slice %135 {offsets = [0, 72], sizes = [1, 8], strides = [1, 1]} : vector<1x112xf32> to vector<1x8xf32>
    %150 = arith.maximumf %148, %149 : vector<1x8xf32>
    %151 = vector.extract_strided_slice %135 {offsets = [0, 80], sizes = [1, 8], strides = [1, 1]} : vector<1x112xf32> to vector<1x8xf32>
    %152 = vector.extract_strided_slice %135 {offsets = [0, 88], sizes = [1, 8], strides = [1, 1]} : vector<1x112xf32> to vector<1x8xf32>
    %153 = arith.maximumf %151, %152 : vector<1x8xf32>
    %154 = vector.extract_strided_slice %135 {offsets = [0, 96], sizes = [1, 8], strides = [1, 1]} : vector<1x112xf32> to vector<1x8xf32>
    %155 = vector.extract_strided_slice %135 {offsets = [0, 104], sizes = [1, 8], strides = [1, 1]} : vector<1x112xf32> to vector<1x8xf32>
    %156 = arith.maximumf %154, %155 : vector<1x8xf32>
    %157 = tpu.concatenate %138, %141, %144, %147, %150, %153, %156 in 1 : vector<1x8xf32>, vector<1x8xf32>, vector<1x8xf32>, vector<1x8xf32>, vector<1x8xf32>, vector<1x8xf32>, vector<1x8xf32> -> vector<1x56xf32>
    %c4 = arith.constant 4 : index
    %c0_20 = arith.constant 0 : index
    %158 = vector.load %arg12[%c4, %c0_20] : memref<14x56xf32, #tpu.memory_space<vmem>>, vector<1x56xf32>
    tpu.vector_store %arg12[%c4, %c0_20], %157 {strides = array<i32>} : memref<14x56xf32, #tpu.memory_space<vmem>>, vector<1x56xf32>,
    %159 = vector.extract_strided_slice %28 {offsets = [10, 0], sizes = [1, 112], strides = [1, 1]} : vector<28x112xf32> to vector<1x112xf32>
    %160 = vector.extract_strided_slice %28 {offsets = [11, 0], sizes = [1, 112], strides = [1, 1]} : vector<28x112xf32> to vector<1x112xf32>
    %161 = arith.maximumf %159, %160 : vector<1x112xf32>
    %162 = vector.extract_strided_slice %161 {offsets = [0, 0], sizes = [1, 8], strides = [1, 1]} : vector<1x112xf32> to vector<1x8xf32>
    %163 = vector.extract_strided_slice %161 {offsets = [0, 8], sizes = [1, 8], strides = [1, 1]} : vector<1x112xf32> to vector<1x8xf32>
    %164 = arith.maximumf %162, %163 : vector<1x8xf32>
    %165 = vector.extract_strided_slice %161 {offsets = [0, 16], sizes = [1, 8], strides = [1, 1]} : vector<1x112xf32> to vector<1x8xf32>
    %166 = vector.extract_strided_slice %161 {offsets = [0, 24], sizes = [1, 8], strides = [1, 1]} : vector<1x112xf32> to vector<1x8xf32>
    %167 = arith.maximumf %165, %166 : vector<1x8xf32>
    %168 = vector.extract_strided_slice %161 {offsets = [0, 32], sizes = [1, 8], strides = [1, 1]} : vector<1x112xf32> to vector<1x8xf32>
    %169 = vector.extract_strided_slice %161 {offsets = [0, 40], sizes = [1, 8], strides = [1, 1]} : vector<1x112xf32> to vector<1x8xf32>
    %170 = arith.maximumf %168, %169 : vector<1x8xf32>
    %171 = vector.extract_strided_slice %161 {offsets = [0, 48], sizes = [1, 8], strides = [1, 1]} : vector<1x112xf32> to vector<1x8xf32>
    %172 = vector.extract_strided_slice %161 {offsets = [0, 56], sizes = [1, 8], strides = [1, 1]} : vector<1x112xf32> to vector<1x8xf32>
    %173 = arith.maximumf %171, %172 : vector<1x8xf32>
    %174 = vector.extract_strided_slice %161 {offsets = [0, 64], sizes = [1, 8], strides = [1, 1]} : vector<1x112xf32> to vector<1x8xf32>
    %175 = vector.extract_strided_slice %161 {offsets = [0, 72], sizes = [1, 8], strides = [1, 1]} : vector<1x112xf32> to vector<1x8xf32>
    %176 = arith.maximumf %174, %175 : vector<1x8xf32>
    %177 = vector.extract_strided_slice %161 {offsets = [0, 80], sizes = [1, 8], strides = [1, 1]} : vector<1x112xf32> to vector<1x8xf32>
    %178 = vector.extract_strided_slice %161 {offsets = [0, 88], sizes = [1, 8], strides = [1, 1]} : vector<1x112xf32> to vector<1x8xf32>
    %179 = arith.maximumf %177, %178 : vector<1x8xf32>
    %180 = vector.extract_strided_slice %161 {offsets = [0, 96], sizes = [1, 8], strides = [1, 1]} : vector<1x112xf32> to vector<1x8xf32>
    %181 = vector.extract_strided_slice %161 {offsets = [0, 104], sizes = [1, 8], strides = [1, 1]} : vector<1x112xf32> to vector<1x8xf32>
    %182 = arith.maximumf %180, %181 : vector<1x8xf32>
    %183 = tpu.concatenate %164, %167, %170, %173, %176, %179, %182 in 1 : vector<1x8xf32>, vector<1x8xf32>, vector<1x8xf32>, vector<1x8xf32>, vector<1x8xf32>, vector<1x8xf32>, vector<1x8xf32> -> vector<1x56xf32>
    %c5 = arith.constant 5 : index
    %c0_21 = arith.constant 0 : index
    %184 = vector.load %arg12[%c5, %c0_21] : memref<14x56xf32, #tpu.memory_space<vmem>>, vector<1x56xf32>
    tpu.vector_store %arg12[%c5, %c0_21], %183 {strides = array<i32>} : memref<14x56xf32, #tpu.memory_space<vmem>>, vector<1x56xf32>,
    %185 = vector.extract_strided_slice %28 {offsets = [12, 0], sizes = [1, 112], strides = [1, 1]} : vector<28x112xf32> to vector<1x112xf32>
    %186 = vector.extract_strided_slice %28 {offsets = [13, 0], sizes = [1, 112], strides = [1, 1]} : vector<28x112xf32> to vector<1x112xf32>
    %187 = arith.maximumf %185, %186 : vector<1x112xf32>
    %188 = vector.extract_strided_slice %187 {offsets = [0, 0], sizes = [1, 8], strides = [1, 1]} : vector<1x112xf32> to vector<1x8xf32>
    %189 = vector.extract_strided_slice %187 {offsets = [0, 8], sizes = [1, 8], strides = [1, 1]} : vector<1x112xf32> to vector<1x8xf32>
    %190 = arith.maximumf %188, %189 : vector<1x8xf32>
    %191 = vector.extract_strided_slice %187 {offsets = [0, 16], sizes = [1, 8], strides = [1, 1]} : vector<1x112xf32> to vector<1x8xf32>
    %192 = vector.extract_strided_slice %187 {offsets = [0, 24], sizes = [1, 8], strides = [1, 1]} : vector<1x112xf32> to vector<1x8xf32>
    %193 = arith.maximumf %191, %192 : vector<1x8xf32>
    %194 = vector.extract_strided_slice %187 {offsets = [0, 32], sizes = [1, 8], strides = [1, 1]} : vector<1x112xf32> to vector<1x8xf32>
    %195 = vector.extract_strided_slice %187 {offsets = [0, 40], sizes = [1, 8], strides = [1, 1]} : vector<1x112xf32> to vector<1x8xf32>
    %196 = arith.maximumf %194, %195 : vector<1x8xf32>
    %197 = vector.extract_strided_slice %187 {offsets = [0, 48], sizes = [1, 8], strides = [1, 1]} : vector<1x112xf32> to vector<1x8xf32>
    %198 = vector.extract_strided_slice %187 {offsets = [0, 56], sizes = [1, 8], strides = [1, 1]} : vector<1x112xf32> to vector<1x8xf32>
    %199 = arith.maximumf %197, %198 : vector<1x8xf32>
    %200 = vector.extract_strided_slice %187 {offsets = [0, 64], sizes = [1, 8], strides = [1, 1]} : vector<1x112xf32> to vector<1x8xf32>
    %201 = vector.extract_strided_slice %187 {offsets = [0, 72], sizes = [1, 8], strides = [1, 1]} : vector<1x112xf32> to vector<1x8xf32>
    %202 = arith.maximumf %200, %201 : vector<1x8xf32>
    %203 = vector.extract_strided_slice %187 {offsets = [0, 80], sizes = [1, 8], strides = [1, 1]} : vector<1x112xf32> to vector<1x8xf32>
    %204 = vector.extract_strided_slice %187 {offsets = [0, 88], sizes = [1, 8], strides = [1, 1]} : vector<1x112xf32> to vector<1x8xf32>
    %205 = arith.maximumf %203, %204 : vector<1x8xf32>
    %206 = vector.extract_strided_slice %187 {offsets = [0, 96], sizes = [1, 8], strides = [1, 1]} : vector<1x112xf32> to vector<1x8xf32>
    %207 = vector.extract_strided_slice %187 {offsets = [0, 104], sizes = [1, 8], strides = [1, 1]} : vector<1x112xf32> to vector<1x8xf32>
    %208 = arith.maximumf %206, %207 : vector<1x8xf32>
    %209 = tpu.concatenate %190, %193, %196, %199, %202, %205, %208 in 1 : vector<1x8xf32>, vector<1x8xf32>, vector<1x8xf32>, vector<1x8xf32>, vector<1x8xf32>, vector<1x8xf32>, vector<1x8xf32> -> vector<1x56xf32>
    %c6 = arith.constant 6 : index
    %c0_22 = arith.constant 0 : index
    %210 = vector.load %arg12[%c6, %c0_22] : memref<14x56xf32, #tpu.memory_space<vmem>>, vector<1x56xf32>
    tpu.vector_store %arg12[%c6, %c0_22], %209 {strides = array<i32>} : memref<14x56xf32, #tpu.memory_space<vmem>>, vector<1x56xf32>,
    %211 = vector.extract_strided_slice %28 {offsets = [14, 0], sizes = [1, 112], strides = [1, 1]} : vector<28x112xf32> to vector<1x112xf32>
    %212 = vector.extract_strided_slice %28 {offsets = [15, 0], sizes = [1, 112], strides = [1, 1]} : vector<28x112xf32> to vector<1x112xf32>
    %213 = arith.maximumf %211, %212 : vector<1x112xf32>
    %214 = vector.extract_strided_slice %213 {offsets = [0, 0], sizes = [1, 8], strides = [1, 1]} : vector<1x112xf32> to vector<1x8xf32>
    %215 = vector.extract_strided_slice %213 {offsets = [0, 8], sizes = [1, 8], strides = [1, 1]} : vector<1x112xf32> to vector<1x8xf32>
    %216 = arith.maximumf %214, %215 : vector<1x8xf32>
    %217 = vector.extract_strided_slice %213 {offsets = [0, 16], sizes = [1, 8], strides = [1, 1]} : vector<1x112xf32> to vector<1x8xf32>
    %218 = vector.extract_strided_slice %213 {offsets = [0, 24], sizes = [1, 8], strides = [1, 1]} : vector<1x112xf32> to vector<1x8xf32>
    %219 = arith.maximumf %217, %218 : vector<1x8xf32>
    %220 = vector.extract_strided_slice %213 {offsets = [0, 32], sizes = [1, 8], strides = [1, 1]} : vector<1x112xf32> to vector<1x8xf32>
    %221 = vector.extract_strided_slice %213 {offsets = [0, 40], sizes = [1, 8], strides = [1, 1]} : vector<1x112xf32> to vector<1x8xf32>
    %222 = arith.maximumf %220, %221 : vector<1x8xf32>
    %223 = vector.extract_strided_slice %213 {offsets = [0, 48], sizes = [1, 8], strides = [1, 1]} : vector<1x112xf32> to vector<1x8xf32>
    %224 = vector.extract_strided_slice %213 {offsets = [0, 56], sizes = [1, 8], strides = [1, 1]} : vector<1x112xf32> to vector<1x8xf32>
    %225 = arith.maximumf %223, %224 : vector<1x8xf32>
    %226 = vector.extract_strided_slice %213 {offsets = [0, 64], sizes = [1, 8], strides = [1, 1]} : vector<1x112xf32> to vector<1x8xf32>
    %227 = vector.extract_strided_slice %213 {offsets = [0, 72], sizes = [1, 8], strides = [1, 1]} : vector<1x112xf32> to vector<1x8xf32>
    %228 = arith.maximumf %226, %227 : vector<1x8xf32>
    %229 = vector.extract_strided_slice %213 {offsets = [0, 80], sizes = [1, 8], strides = [1, 1]} : vector<1x112xf32> to vector<1x8xf32>
    %230 = vector.extract_strided_slice %213 {offsets = [0, 88], sizes = [1, 8], strides = [1, 1]} : vector<1x112xf32> to vector<1x8xf32>
    %231 = arith.maximumf %229, %230 : vector<1x8xf32>
    %232 = vector.extract_strided_slice %213 {offsets = [0, 96], sizes = [1, 8], strides = [1, 1]} : vector<1x112xf32> to vector<1x8xf32>
    %233 = vector.extract_strided_slice %213 {offsets = [0, 104], sizes = [1, 8], strides = [1, 1]} : vector<1x112xf32> to vector<1x8xf32>
    %234 = arith.maximumf %232, %233 : vector<1x8xf32>
    %235 = tpu.concatenate %216, %219, %222, %225, %228, %231, %234 in 1 : vector<1x8xf32>, vector<1x8xf32>, vector<1x8xf32>, vector<1x8xf32>, vector<1x8xf32>, vector<1x8xf32>, vector<1x8xf32> -> vector<1x56xf32>
    %c7 = arith.constant 7 : index
    %c0_23 = arith.constant 0 : index
    %236 = vector.load %arg12[%c7, %c0_23] : memref<14x56xf32, #tpu.memory_space<vmem>>, vector<1x56xf32>
    tpu.vector_store %arg12[%c7, %c0_23], %235 {strides = array<i32>} : memref<14x56xf32, #tpu.memory_space<vmem>>, vector<1x56xf32>,
    %237 = vector.extract_strided_slice %28 {offsets = [16, 0], sizes = [1, 112], strides = [1, 1]} : vector<28x112xf32> to vector<1x112xf32>
    %238 = vector.extract_strided_slice %28 {offsets = [17, 0], sizes = [1, 112], strides = [1, 1]} : vector<28x112xf32> to vector<1x112xf32>
    %239 = arith.maximumf %237, %238 : vector<1x112xf32>
    %240 = vector.extract_strided_slice %239 {offsets = [0, 0], sizes = [1, 8], strides = [1, 1]} : vector<1x112xf32> to vector<1x8xf32>
    %241 = vector.extract_strided_slice %239 {offsets = [0, 8], sizes = [1, 8], strides = [1, 1]} : vector<1x112xf32> to vector<1x8xf32>
    %242 = arith.maximumf %240, %241 : vector<1x8xf32>
    %243 = vector.extract_strided_slice %239 {offsets = [0, 16], sizes = [1, 8], strides = [1, 1]} : vector<1x112xf32> to vector<1x8xf32>
    %244 = vector.extract_strided_slice %239 {offsets = [0, 24], sizes = [1, 8], strides = [1, 1]} : vector<1x112xf32> to vector<1x8xf32>
    %245 = arith.maximumf %243, %244 : vector<1x8xf32>
    %246 = vector.extract_strided_slice %239 {offsets = [0, 32], sizes = [1, 8], strides = [1, 1]} : vector<1x112xf32> to vector<1x8xf32>
    %247 = vector.extract_strided_slice %239 {offsets = [0, 40], sizes = [1, 8], strides = [1, 1]} : vector<1x112xf32> to vector<1x8xf32>
    %248 = arith.maximumf %246, %247 : vector<1x8xf32>
    %249 = vector.extract_strided_slice %239 {offsets = [0, 48], sizes = [1, 8], strides = [1, 1]} : vector<1x112xf32> to vector<1x8xf32>
    %250 = vector.extract_strided_slice %239 {offsets = [0, 56], sizes = [1, 8], strides = [1, 1]} : vector<1x112xf32> to vector<1x8xf32>
    %251 = arith.maximumf %249, %250 : vector<1x8xf32>
    %252 = vector.extract_strided_slice %239 {offsets = [0, 64], sizes = [1, 8], strides = [1, 1]} : vector<1x112xf32> to vector<1x8xf32>
    %253 = vector.extract_strided_slice %239 {offsets = [0, 72], sizes = [1, 8], strides = [1, 1]} : vector<1x112xf32> to vector<1x8xf32>
    %254 = arith.maximumf %252, %253 : vector<1x8xf32>
    %255 = vector.extract_strided_slice %239 {offsets = [0, 80], sizes = [1, 8], strides = [1, 1]} : vector<1x112xf32> to vector<1x8xf32>
    %256 = vector.extract_strided_slice %239 {offsets = [0, 88], sizes = [1, 8], strides = [1, 1]} : vector<1x112xf32> to vector<1x8xf32>
    %257 = arith.maximumf %255, %256 : vector<1x8xf32>
    %258 = vector.extract_strided_slice %239 {offsets = [0, 96], sizes = [1, 8], strides = [1, 1]} : vector<1x112xf32> to vector<1x8xf32>
    %259 = vector.extract_strided_slice %239 {offsets = [0, 104], sizes = [1, 8], strides = [1, 1]} : vector<1x112xf32> to vector<1x8xf32>
    %260 = arith.maximumf %258, %259 : vector<1x8xf32>
    %261 = tpu.concatenate %242, %245, %248, %251, %254, %257, %260 in 1 : vector<1x8xf32>, vector<1x8xf32>, vector<1x8xf32>, vector<1x8xf32>, vector<1x8xf32>, vector<1x8xf32>, vector<1x8xf32> -> vector<1x56xf32>
    %c8 = arith.constant 8 : index
    %c0_24 = arith.constant 0 : index
    %262 = vector.load %arg12[%c8, %c0_24] : memref<14x56xf32, #tpu.memory_space<vmem>>, vector<1x56xf32>
    tpu.vector_store %arg12[%c8, %c0_24], %261 {strides = array<i32>} : memref<14x56xf32, #tpu.memory_space<vmem>>, vector<1x56xf32>,
    %263 = vector.extract_strided_slice %28 {offsets = [18, 0], sizes = [1, 112], strides = [1, 1]} : vector<28x112xf32> to vector<1x112xf32>
    %264 = vector.extract_strided_slice %28 {offsets = [19, 0], sizes = [1, 112], strides = [1, 1]} : vector<28x112xf32> to vector<1x112xf32>
    %265 = arith.maximumf %263, %264 : vector<1x112xf32>
    %266 = vector.extract_strided_slice %265 {offsets = [0, 0], sizes = [1, 8], strides = [1, 1]} : vector<1x112xf32> to vector<1x8xf32>
    %267 = vector.extract_strided_slice %265 {offsets = [0, 8], sizes = [1, 8], strides = [1, 1]} : vector<1x112xf32> to vector<1x8xf32>
    %268 = arith.maximumf %266, %267 : vector<1x8xf32>
    %269 = vector.extract_strided_slice %265 {offsets = [0, 16], sizes = [1, 8], strides = [1, 1]} : vector<1x112xf32> to vector<1x8xf32>
    %270 = vector.extract_strided_slice %265 {offsets = [0, 24], sizes = [1, 8], strides = [1, 1]} : vector<1x112xf32> to vector<1x8xf32>
    %271 = arith.maximumf %269, %270 : vector<1x8xf32>
    %272 = vector.extract_strided_slice %265 {offsets = [0, 32], sizes = [1, 8], strides = [1, 1]} : vector<1x112xf32> to vector<1x8xf32>
    %273 = vector.extract_strided_slice %265 {offsets = [0, 40], sizes = [1, 8], strides = [1, 1]} : vector<1x112xf32> to vector<1x8xf32>
    %274 = arith.maximumf %272, %273 : vector<1x8xf32>
    %275 = vector.extract_strided_slice %265 {offsets = [0, 48], sizes = [1, 8], strides = [1, 1]} : vector<1x112xf32> to vector<1x8xf32>
    %276 = vector.extract_strided_slice %265 {offsets = [0, 56], sizes = [1, 8], strides = [1, 1]} : vector<1x112xf32> to vector<1x8xf32>
    %277 = arith.maximumf %275, %276 : vector<1x8xf32>
    %278 = vector.extract_strided_slice %265 {offsets = [0, 64], sizes = [1, 8], strides = [1, 1]} : vector<1x112xf32> to vector<1x8xf32>
    %279 = vector.extract_strided_slice %265 {offsets = [0, 72], sizes = [1, 8], strides = [1, 1]} : vector<1x112xf32> to vector<1x8xf32>
    %280 = arith.maximumf %278, %279 : vector<1x8xf32>
    %281 = vector.extract_strided_slice %265 {offsets = [0, 80], sizes = [1, 8], strides = [1, 1]} : vector<1x112xf32> to vector<1x8xf32>
    %282 = vector.extract_strided_slice %265 {offsets = [0, 88], sizes = [1, 8], strides = [1, 1]} : vector<1x112xf32> to vector<1x8xf32>
    %283 = arith.maximumf %281, %282 : vector<1x8xf32>
    %284 = vector.extract_strided_slice %265 {offsets = [0, 96], sizes = [1, 8], strides = [1, 1]} : vector<1x112xf32> to vector<1x8xf32>
    %285 = vector.extract_strided_slice %265 {offsets = [0, 104], sizes = [1, 8], strides = [1, 1]} : vector<1x112xf32> to vector<1x8xf32>
    %286 = arith.maximumf %284, %285 : vector<1x8xf32>
    %287 = tpu.concatenate %268, %271, %274, %277, %280, %283, %286 in 1 : vector<1x8xf32>, vector<1x8xf32>, vector<1x8xf32>, vector<1x8xf32>, vector<1x8xf32>, vector<1x8xf32>, vector<1x8xf32> -> vector<1x56xf32>
    %c9 = arith.constant 9 : index
    %c0_25 = arith.constant 0 : index
    %288 = vector.load %arg12[%c9, %c0_25] : memref<14x56xf32, #tpu.memory_space<vmem>>, vector<1x56xf32>
    tpu.vector_store %arg12[%c9, %c0_25], %287 {strides = array<i32>} : memref<14x56xf32, #tpu.memory_space<vmem>>, vector<1x56xf32>,
    %289 = vector.extract_strided_slice %28 {offsets = [20, 0], sizes = [1, 112], strides = [1, 1]} : vector<28x112xf32> to vector<1x112xf32>
    %290 = vector.extract_strided_slice %28 {offsets = [21, 0], sizes = [1, 112], strides = [1, 1]} : vector<28x112xf32> to vector<1x112xf32>
    %291 = arith.maximumf %289, %290 : vector<1x112xf32>
    %292 = vector.extract_strided_slice %291 {offsets = [0, 0], sizes = [1, 8], strides = [1, 1]} : vector<1x112xf32> to vector<1x8xf32>
    %293 = vector.extract_strided_slice %291 {offsets = [0, 8], sizes = [1, 8], strides = [1, 1]} : vector<1x112xf32> to vector<1x8xf32>
    %294 = arith.maximumf %292, %293 : vector<1x8xf32>
    %295 = vector.extract_strided_slice %291 {offsets = [0, 16], sizes = [1, 8], strides = [1, 1]} : vector<1x112xf32> to vector<1x8xf32>
    %296 = vector.extract_strided_slice %291 {offsets = [0, 24], sizes = [1, 8], strides = [1, 1]} : vector<1x112xf32> to vector<1x8xf32>
    %297 = arith.maximumf %295, %296 : vector<1x8xf32>
    %298 = vector.extract_strided_slice %291 {offsets = [0, 32], sizes = [1, 8], strides = [1, 1]} : vector<1x112xf32> to vector<1x8xf32>
    %299 = vector.extract_strided_slice %291 {offsets = [0, 40], sizes = [1, 8], strides = [1, 1]} : vector<1x112xf32> to vector<1x8xf32>
    %300 = arith.maximumf %298, %299 : vector<1x8xf32>
    %301 = vector.extract_strided_slice %291 {offsets = [0, 48], sizes = [1, 8], strides = [1, 1]} : vector<1x112xf32> to vector<1x8xf32>
    %302 = vector.extract_strided_slice %291 {offsets = [0, 56], sizes = [1, 8], strides = [1, 1]} : vector<1x112xf32> to vector<1x8xf32>
    %303 = arith.maximumf %301, %302 : vector<1x8xf32>
    %304 = vector.extract_strided_slice %291 {offsets = [0, 64], sizes = [1, 8], strides = [1, 1]} : vector<1x112xf32> to vector<1x8xf32>
    %305 = vector.extract_strided_slice %291 {offsets = [0, 72], sizes = [1, 8], strides = [1, 1]} : vector<1x112xf32> to vector<1x8xf32>
    %306 = arith.maximumf %304, %305 : vector<1x8xf32>
    %307 = vector.extract_strided_slice %291 {offsets = [0, 80], sizes = [1, 8], strides = [1, 1]} : vector<1x112xf32> to vector<1x8xf32>
    %308 = vector.extract_strided_slice %291 {offsets = [0, 88], sizes = [1, 8], strides = [1, 1]} : vector<1x112xf32> to vector<1x8xf32>
    %309 = arith.maximumf %307, %308 : vector<1x8xf32>
    %310 = vector.extract_strided_slice %291 {offsets = [0, 96], sizes = [1, 8], strides = [1, 1]} : vector<1x112xf32> to vector<1x8xf32>
    %311 = vector.extract_strided_slice %291 {offsets = [0, 104], sizes = [1, 8], strides = [1, 1]} : vector<1x112xf32> to vector<1x8xf32>
    %312 = arith.maximumf %310, %311 : vector<1x8xf32>
    %313 = tpu.concatenate %294, %297, %300, %303, %306, %309, %312 in 1 : vector<1x8xf32>, vector<1x8xf32>, vector<1x8xf32>, vector<1x8xf32>, vector<1x8xf32>, vector<1x8xf32>, vector<1x8xf32> -> vector<1x56xf32>
    %c10 = arith.constant 10 : index
    %c0_26 = arith.constant 0 : index
    %314 = vector.load %arg12[%c10, %c0_26] : memref<14x56xf32, #tpu.memory_space<vmem>>, vector<1x56xf32>
    tpu.vector_store %arg12[%c10, %c0_26], %313 {strides = array<i32>} : memref<14x56xf32, #tpu.memory_space<vmem>>, vector<1x56xf32>,
    %315 = vector.extract_strided_slice %28 {offsets = [22, 0], sizes = [1, 112], strides = [1, 1]} : vector<28x112xf32> to vector<1x112xf32>
    %316 = vector.extract_strided_slice %28 {offsets = [23, 0], sizes = [1, 112], strides = [1, 1]} : vector<28x112xf32> to vector<1x112xf32>
    %317 = arith.maximumf %315, %316 : vector<1x112xf32>
    %318 = vector.extract_strided_slice %317 {offsets = [0, 0], sizes = [1, 8], strides = [1, 1]} : vector<1x112xf32> to vector<1x8xf32>
    %319 = vector.extract_strided_slice %317 {offsets = [0, 8], sizes = [1, 8], strides = [1, 1]} : vector<1x112xf32> to vector<1x8xf32>
    %320 = arith.maximumf %318, %319 : vector<1x8xf32>
    %321 = vector.extract_strided_slice %317 {offsets = [0, 16], sizes = [1, 8], strides = [1, 1]} : vector<1x112xf32> to vector<1x8xf32>
    %322 = vector.extract_strided_slice %317 {offsets = [0, 24], sizes = [1, 8], strides = [1, 1]} : vector<1x112xf32> to vector<1x8xf32>
    %323 = arith.maximumf %321, %322 : vector<1x8xf32>
    %324 = vector.extract_strided_slice %317 {offsets = [0, 32], sizes = [1, 8], strides = [1, 1]} : vector<1x112xf32> to vector<1x8xf32>
    %325 = vector.extract_strided_slice %317 {offsets = [0, 40], sizes = [1, 8], strides = [1, 1]} : vector<1x112xf32> to vector<1x8xf32>
    %326 = arith.maximumf %324, %325 : vector<1x8xf32>
    %327 = vector.extract_strided_slice %317 {offsets = [0, 48], sizes = [1, 8], strides = [1, 1]} : vector<1x112xf32> to vector<1x8xf32>
    %328 = vector.extract_strided_slice %317 {offsets = [0, 56], sizes = [1, 8], strides = [1, 1]} : vector<1x112xf32> to vector<1x8xf32>
    %329 = arith.maximumf %327, %328 : vector<1x8xf32>
    %330 = vector.extract_strided_slice %317 {offsets = [0, 64], sizes = [1, 8], strides = [1, 1]} : vector<1x112xf32> to vector<1x8xf32>
    %331 = vector.extract_strided_slice %317 {offsets = [0, 72], sizes = [1, 8], strides = [1, 1]} : vector<1x112xf32> to vector<1x8xf32>
    %332 = arith.maximumf %330, %331 : vector<1x8xf32>
    %333 = vector.extract_strided_slice %317 {offsets = [0, 80], sizes = [1, 8], strides = [1, 1]} : vector<1x112xf32> to vector<1x8xf32>
    %334 = vector.extract_strided_slice %317 {offsets = [0, 88], sizes = [1, 8], strides = [1, 1]} : vector<1x112xf32> to vector<1x8xf32>
    %335 = arith.maximumf %333, %334 : vector<1x8xf32>
    %336 = vector.extract_strided_slice %317 {offsets = [0, 96], sizes = [1, 8], strides = [1, 1]} : vector<1x112xf32> to vector<1x8xf32>
    %337 = vector.extract_strided_slice %317 {offsets = [0, 104], sizes = [1, 8], strides = [1, 1]} : vector<1x112xf32> to vector<1x8xf32>
    %338 = arith.maximumf %336, %337 : vector<1x8xf32>
    %339 = tpu.concatenate %320, %323, %326, %329, %332, %335, %338 in 1 : vector<1x8xf32>, vector<1x8xf32>, vector<1x8xf32>, vector<1x8xf32>, vector<1x8xf32>, vector<1x8xf32>, vector<1x8xf32> -> vector<1x56xf32>
    %c11 = arith.constant 11 : index
    %c0_27 = arith.constant 0 : index
    %340 = vector.load %arg12[%c11, %c0_27] : memref<14x56xf32, #tpu.memory_space<vmem>>, vector<1x56xf32>
    tpu.vector_store %arg12[%c11, %c0_27], %339 {strides = array<i32>} : memref<14x56xf32, #tpu.memory_space<vmem>>, vector<1x56xf32>,
    %341 = vector.extract_strided_slice %28 {offsets = [24, 0], sizes = [1, 112], strides = [1, 1]} : vector<28x112xf32> to vector<1x112xf32>
    %342 = vector.extract_strided_slice %28 {offsets = [25, 0], sizes = [1, 112], strides = [1, 1]} : vector<28x112xf32> to vector<1x112xf32>
    %343 = arith.maximumf %341, %342 : vector<1x112xf32>
    %344 = vector.extract_strided_slice %343 {offsets = [0, 0], sizes = [1, 8], strides = [1, 1]} : vector<1x112xf32> to vector<1x8xf32>
    %345 = vector.extract_strided_slice %343 {offsets = [0, 8], sizes = [1, 8], strides = [1, 1]} : vector<1x112xf32> to vector<1x8xf32>
    %346 = arith.maximumf %344, %345 : vector<1x8xf32>
    %347 = vector.extract_strided_slice %343 {offsets = [0, 16], sizes = [1, 8], strides = [1, 1]} : vector<1x112xf32> to vector<1x8xf32>
    %348 = vector.extract_strided_slice %343 {offsets = [0, 24], sizes = [1, 8], strides = [1, 1]} : vector<1x112xf32> to vector<1x8xf32>
    %349 = arith.maximumf %347, %348 : vector<1x8xf32>
    %350 = vector.extract_strided_slice %343 {offsets = [0, 32], sizes = [1, 8], strides = [1, 1]} : vector<1x112xf32> to vector<1x8xf32>
    %351 = vector.extract_strided_slice %343 {offsets = [0, 40], sizes = [1, 8], strides = [1, 1]} : vector<1x112xf32> to vector<1x8xf32>
    %352 = arith.maximumf %350, %351 : vector<1x8xf32>
    %353 = vector.extract_strided_slice %343 {offsets = [0, 48], sizes = [1, 8], strides = [1, 1]} : vector<1x112xf32> to vector<1x8xf32>
    %354 = vector.extract_strided_slice %343 {offsets = [0, 56], sizes = [1, 8], strides = [1, 1]} : vector<1x112xf32> to vector<1x8xf32>
    %355 = arith.maximumf %353, %354 : vector<1x8xf32>
    %356 = vector.extract_strided_slice %343 {offsets = [0, 64], sizes = [1, 8], strides = [1, 1]} : vector<1x112xf32> to vector<1x8xf32>
    %357 = vector.extract_strided_slice %343 {offsets = [0, 72], sizes = [1, 8], strides = [1, 1]} : vector<1x112xf32> to vector<1x8xf32>
    %358 = arith.maximumf %356, %357 : vector<1x8xf32>
    %359 = vector.extract_strided_slice %343 {offsets = [0, 80], sizes = [1, 8], strides = [1, 1]} : vector<1x112xf32> to vector<1x8xf32>
    %360 = vector.extract_strided_slice %343 {offsets = [0, 88], sizes = [1, 8], strides = [1, 1]} : vector<1x112xf32> to vector<1x8xf32>
    %361 = arith.maximumf %359, %360 : vector<1x8xf32>
    %362 = vector.extract_strided_slice %343 {offsets = [0, 96], sizes = [1, 8], strides = [1, 1]} : vector<1x112xf32> to vector<1x8xf32>
    %363 = vector.extract_strided_slice %343 {offsets = [0, 104], sizes = [1, 8], strides = [1, 1]} : vector<1x112xf32> to vector<1x8xf32>
    %364 = arith.maximumf %362, %363 : vector<1x8xf32>
    %365 = tpu.concatenate %346, %349, %352, %355, %358, %361, %364 in 1 : vector<1x8xf32>, vector<1x8xf32>, vector<1x8xf32>, vector<1x8xf32>, vector<1x8xf32>, vector<1x8xf32>, vector<1x8xf32> -> vector<1x56xf32>
    %c12 = arith.constant 12 : index
    %c0_28 = arith.constant 0 : index
    %366 = vector.load %arg12[%c12, %c0_28] : memref<14x56xf32, #tpu.memory_space<vmem>>, vector<1x56xf32>
    tpu.vector_store %arg12[%c12, %c0_28], %365 {strides = array<i32>} : memref<14x56xf32, #tpu.memory_space<vmem>>, vector<1x56xf32>,
    %367 = vector.extract_strided_slice %28 {offsets = [26, 0], sizes = [1, 112], strides = [1, 1]} : vector<28x112xf32> to vector<1x112xf32>
    %368 = vector.extract_strided_slice %28 {offsets = [27, 0], sizes = [1, 112], strides = [1, 1]} : vector<28x112xf32> to vector<1x112xf32>
    %369 = arith.maximumf %367, %368 : vector<1x112xf32>
    %370 = vector.extract_strided_slice %369 {offsets = [0, 0], sizes = [1, 8], strides = [1, 1]} : vector<1x112xf32> to vector<1x8xf32>
    %371 = vector.extract_strided_slice %369 {offsets = [0, 8], sizes = [1, 8], strides = [1, 1]} : vector<1x112xf32> to vector<1x8xf32>
    %372 = arith.maximumf %370, %371 : vector<1x8xf32>
    %373 = vector.extract_strided_slice %369 {offsets = [0, 16], sizes = [1, 8], strides = [1, 1]} : vector<1x112xf32> to vector<1x8xf32>
    %374 = vector.extract_strided_slice %369 {offsets = [0, 24], sizes = [1, 8], strides = [1, 1]} : vector<1x112xf32> to vector<1x8xf32>
    %375 = arith.maximumf %373, %374 : vector<1x8xf32>
    %376 = vector.extract_strided_slice %369 {offsets = [0, 32], sizes = [1, 8], strides = [1, 1]} : vector<1x112xf32> to vector<1x8xf32>
    %377 = vector.extract_strided_slice %369 {offsets = [0, 40], sizes = [1, 8], strides = [1, 1]} : vector<1x112xf32> to vector<1x8xf32>
    %378 = arith.maximumf %376, %377 : vector<1x8xf32>
    %379 = vector.extract_strided_slice %369 {offsets = [0, 48], sizes = [1, 8], strides = [1, 1]} : vector<1x112xf32> to vector<1x8xf32>
    %380 = vector.extract_strided_slice %369 {offsets = [0, 56], sizes = [1, 8], strides = [1, 1]} : vector<1x112xf32> to vector<1x8xf32>
    %381 = arith.maximumf %379, %380 : vector<1x8xf32>
    %382 = vector.extract_strided_slice %369 {offsets = [0, 64], sizes = [1, 8], strides = [1, 1]} : vector<1x112xf32> to vector<1x8xf32>
    %383 = vector.extract_strided_slice %369 {offsets = [0, 72], sizes = [1, 8], strides = [1, 1]} : vector<1x112xf32> to vector<1x8xf32>
    %384 = arith.maximumf %382, %383 : vector<1x8xf32>
    %385 = vector.extract_strided_slice %369 {offsets = [0, 80], sizes = [1, 8], strides = [1, 1]} : vector<1x112xf32> to vector<1x8xf32>
    %386 = vector.extract_strided_slice %369 {offsets = [0, 88], sizes = [1, 8], strides = [1, 1]} : vector<1x112xf32> to vector<1x8xf32>
    %387 = arith.maximumf %385, %386 : vector<1x8xf32>
    %388 = vector.extract_strided_slice %369 {offsets = [0, 96], sizes = [1, 8], strides = [1, 1]} : vector<1x112xf32> to vector<1x8xf32>
    %389 = vector.extract_strided_slice %369 {offsets = [0, 104], sizes = [1, 8], strides = [1, 1]} : vector<1x112xf32> to vector<1x8xf32>
    %390 = arith.maximumf %388, %389 : vector<1x8xf32>
    %391 = tpu.concatenate %372, %375, %378, %381, %384, %387, %390 in 1 : vector<1x8xf32>, vector<1x8xf32>, vector<1x8xf32>, vector<1x8xf32>, vector<1x8xf32>, vector<1x8xf32>, vector<1x8xf32> -> vector<1x56xf32>
    %c13 = arith.constant 13 : index
    %c0_29 = arith.constant 0 : index
    %392 = vector.load %arg12[%c13, %c0_29] : memref<14x56xf32, #tpu.memory_space<vmem>>, vector<1x56xf32>
    tpu.vector_store %arg12[%c13, %c0_29], %391 {strides = array<i32>} : memref<14x56xf32, #tpu.memory_space<vmem>>, vector<1x56xf32>,
    %c0_30 = arith.constant 0 : index
    %c0_31 = arith.constant 0 : index
    %393 = vector.load %arg12[%c0_30, %c0_31] : memref<14x56xf32, #tpu.memory_space<vmem>>, vector<6x56xf32>
    %c7_32 = arith.constant 7 : index
    %c0_33 = arith.constant 0 : index
    %394 = vector.load %arg12[%c7_32, %c0_33] : memref<14x56xf32, #tpu.memory_space<vmem>>, vector<6x56xf32>
    %395 = tpu.concatenate %393, %394 in 0 : vector<6x56xf32>, vector<6x56xf32> -> vector<12x56xf32>
    %396 = arith.truncf %395 : vector<12x56xf32> to vector<12x56xbf16>
    %c0_34 = arith.constant 0 : index
    %c0_35 = arith.constant 0 : index
    %c0_36 = arith.constant 0 : index
    %397 = vector.load %arg3[%c0_34, %c0_35, %c0_36] : memref<2x56x48xbf16, #tpu.memory_space<vmem>>, vector<1x56x48xbf16>
    %398 = vector.shape_cast %397 : vector<1x56x48xbf16> to vector<56x48xbf16>
    %cst_37 = arith.constant dense<0.000000e+00> : vector<12x48xf32>
    %399 = tpu.matmul %396, %398, %cst_37 {dimension_numbers = #tpu.dot_dimension_numbers<[1], [0], [0], [1], [0, 0, 1, 1], [], []>} : vector<12x56xbf16>, vector<56x48xbf16>, vector<12x48xf32> -> vector<12x48xf32>
    %c1_38 = arith.constant 1 : index
    %c0_39 = arith.constant 0 : index
    %400 = vector.load %arg12[%c1_38, %c0_39] : memref<14x56xf32, #tpu.memory_space<vmem>>, vector<6x56xf32>
    %c8_40 = arith.constant 8 : index
    %c0_41 = arith.constant 0 : index
    %401 = vector.load %arg12[%c8_40, %c0_41] : memref<14x56xf32, #tpu.memory_space<vmem>>, vector<6x56xf32>
    %402 = tpu.concatenate %400, %401 in 0 : vector<6x56xf32>, vector<6x56xf32> -> vector<12x56xf32>
    %403 = arith.truncf %402 : vector<12x56xf32> to vector<12x56xbf16>
    %c1_42 = arith.constant 1 : index
    %c0_43 = arith.constant 0 : index
    %c0_44 = arith.constant 0 : index
    %404 = vector.load %arg3[%c1_42, %c0_43, %c0_44] : memref<2x56x48xbf16, #tpu.memory_space<vmem>>, vector<1x56x48xbf16>
    %405 = vector.shape_cast %404 : vector<1x56x48xbf16> to vector<56x48xbf16>
    %cst_45 = arith.constant dense<0.000000e+00> : vector<12x48xf32>
    %406 = tpu.matmul %403, %405, %cst_45 {dimension_numbers = #tpu.dot_dimension_numbers<[1], [0], [0], [1], [0, 0, 1, 1], [], []>} : vector<12x56xbf16>, vector<56x48xbf16>, vector<12x48xf32> -> vector<12x48xf32>
    %407 = arith.addf %399, %406 : vector<12x48xf32>
    %c0_46 = arith.constant 0 : index
    %c0_47 = arith.constant 0 : index
    %408 = vector.load %arg4[%c0_46, %c0_47] : memref<1x48xf32, #tpu.memory_space<vmem>>, vector<1x48xf32>
    %409 = vector.broadcast %408 : vector<1x48xf32> to vector<12x48xf32>
    %410 = arith.addf %407, %409 : vector<12x48xf32>
    %cst_48 = arith.constant 0.000000e+00 : f32
    %411 = vector.broadcast %cst_48 : f32 to vector<12x48xf32>
    %412 = arith.maximumf %410, %411 : vector<12x48xf32>
    %413 = vector.extract_strided_slice %412 {offsets = [0, 0], sizes = [1, 48], strides = [1, 1]} : vector<12x48xf32> to vector<1x48xf32>
    %414 = vector.extract_strided_slice %412 {offsets = [1, 0], sizes = [1, 48], strides = [1, 1]} : vector<12x48xf32> to vector<1x48xf32>
    %415 = arith.maximumf %413, %414 : vector<1x48xf32>
    %416 = vector.extract_strided_slice %415 {offsets = [0, 0], sizes = [1, 8], strides = [1, 1]} : vector<1x48xf32> to vector<1x8xf32>
    %417 = vector.extract_strided_slice %415 {offsets = [0, 8], sizes = [1, 8], strides = [1, 1]} : vector<1x48xf32> to vector<1x8xf32>
    %418 = arith.maximumf %416, %417 : vector<1x8xf32>
    %c0_49 = arith.constant 0 : index
    %c0_50 = arith.constant 0 : index
    %419 = vector.load %arg13[%c0_49, %c0_50] : memref<2x72xf32, #tpu.memory_space<vmem>>, vector<1x8xf32>
    tpu.vector_store %arg13[%c0_49, %c0_50], %418 {strides = array<i32>} : memref<2x72xf32, #tpu.memory_space<vmem>>, vector<1x8xf32>,
    %420 = vector.extract_strided_slice %415 {offsets = [0, 16], sizes = [1, 8], strides = [1, 1]} : vector<1x48xf32> to vector<1x8xf32>
    %421 = vector.extract_strided_slice %415 {offsets = [0, 24], sizes = [1, 8], strides = [1, 1]} : vector<1x48xf32> to vector<1x8xf32>
    %422 = arith.maximumf %420, %421 : vector<1x8xf32>
    %c0_51 = arith.constant 0 : index
    %c8_52 = arith.constant 8 : index
    %423 = vector.load %arg13[%c0_51, %c8_52] : memref<2x72xf32, #tpu.memory_space<vmem>>, vector<1x8xf32>
    tpu.vector_store %arg13[%c0_51, %c8_52], %422 {strides = array<i32>} : memref<2x72xf32, #tpu.memory_space<vmem>>, vector<1x8xf32>,
    %424 = vector.extract_strided_slice %415 {offsets = [0, 32], sizes = [1, 8], strides = [1, 1]} : vector<1x48xf32> to vector<1x8xf32>
    %425 = vector.extract_strided_slice %415 {offsets = [0, 40], sizes = [1, 8], strides = [1, 1]} : vector<1x48xf32> to vector<1x8xf32>
    %426 = arith.maximumf %424, %425 : vector<1x8xf32>
    %c0_53 = arith.constant 0 : index
    %c16 = arith.constant 16 : index
    %427 = vector.load %arg13[%c0_53, %c16] : memref<2x72xf32, #tpu.memory_space<vmem>>, vector<1x8xf32>
    tpu.vector_store %arg13[%c0_53, %c16], %426 {strides = array<i32>} : memref<2x72xf32, #tpu.memory_space<vmem>>, vector<1x8xf32>,
    %428 = vector.extract_strided_slice %412 {offsets = [2, 0], sizes = [1, 48], strides = [1, 1]} : vector<12x48xf32> to vector<1x48xf32>
    %429 = vector.extract_strided_slice %412 {offsets = [3, 0], sizes = [1, 48], strides = [1, 1]} : vector<12x48xf32> to vector<1x48xf32>
    %430 = arith.maximumf %428, %429 : vector<1x48xf32>
    %431 = vector.extract_strided_slice %430 {offsets = [0, 0], sizes = [1, 8], strides = [1, 1]} : vector<1x48xf32> to vector<1x8xf32>
    %432 = vector.extract_strided_slice %430 {offsets = [0, 8], sizes = [1, 8], strides = [1, 1]} : vector<1x48xf32> to vector<1x8xf32>
    %433 = arith.maximumf %431, %432 : vector<1x8xf32>
    %c0_54 = arith.constant 0 : index
    %c24 = arith.constant 24 : index
    %434 = vector.load %arg13[%c0_54, %c24] : memref<2x72xf32, #tpu.memory_space<vmem>>, vector<1x8xf32>
    tpu.vector_store %arg13[%c0_54, %c24], %433 {strides = array<i32>} : memref<2x72xf32, #tpu.memory_space<vmem>>, vector<1x8xf32>,
    %435 = vector.extract_strided_slice %430 {offsets = [0, 16], sizes = [1, 8], strides = [1, 1]} : vector<1x48xf32> to vector<1x8xf32>
    %436 = vector.extract_strided_slice %430 {offsets = [0, 24], sizes = [1, 8], strides = [1, 1]} : vector<1x48xf32> to vector<1x8xf32>
    %437 = arith.maximumf %435, %436 : vector<1x8xf32>
    %c0_55 = arith.constant 0 : index
    %c32 = arith.constant 32 : index
    %438 = vector.load %arg13[%c0_55, %c32] : memref<2x72xf32, #tpu.memory_space<vmem>>, vector<1x8xf32>
    tpu.vector_store %arg13[%c0_55, %c32], %437 {strides = array<i32>} : memref<2x72xf32, #tpu.memory_space<vmem>>, vector<1x8xf32>,
    %439 = vector.extract_strided_slice %430 {offsets = [0, 32], sizes = [1, 8], strides = [1, 1]} : vector<1x48xf32> to vector<1x8xf32>
    %440 = vector.extract_strided_slice %430 {offsets = [0, 40], sizes = [1, 8], strides = [1, 1]} : vector<1x48xf32> to vector<1x8xf32>
    %441 = arith.maximumf %439, %440 : vector<1x8xf32>
    %c0_56 = arith.constant 0 : index
    %c40 = arith.constant 40 : index
    %442 = vector.load %arg13[%c0_56, %c40] : memref<2x72xf32, #tpu.memory_space<vmem>>, vector<1x8xf32>
    tpu.vector_store %arg13[%c0_56, %c40], %441 {strides = array<i32>} : memref<2x72xf32, #tpu.memory_space<vmem>>, vector<1x8xf32>,
    %443 = vector.extract_strided_slice %412 {offsets = [4, 0], sizes = [1, 48], strides = [1, 1]} : vector<12x48xf32> to vector<1x48xf32>
    %444 = vector.extract_strided_slice %412 {offsets = [5, 0], sizes = [1, 48], strides = [1, 1]} : vector<12x48xf32> to vector<1x48xf32>
    %445 = arith.maximumf %443, %444 : vector<1x48xf32>
    %446 = vector.extract_strided_slice %445 {offsets = [0, 0], sizes = [1, 8], strides = [1, 1]} : vector<1x48xf32> to vector<1x8xf32>
    %447 = vector.extract_strided_slice %445 {offsets = [0, 8], sizes = [1, 8], strides = [1, 1]} : vector<1x48xf32> to vector<1x8xf32>
    %448 = arith.maximumf %446, %447 : vector<1x8xf32>
    %c0_57 = arith.constant 0 : index
    %c48 = arith.constant 48 : index
    %449 = vector.load %arg13[%c0_57, %c48] : memref<2x72xf32, #tpu.memory_space<vmem>>, vector<1x8xf32>
    tpu.vector_store %arg13[%c0_57, %c48], %448 {strides = array<i32>} : memref<2x72xf32, #tpu.memory_space<vmem>>, vector<1x8xf32>,
    %450 = vector.extract_strided_slice %445 {offsets = [0, 16], sizes = [1, 8], strides = [1, 1]} : vector<1x48xf32> to vector<1x8xf32>
    %451 = vector.extract_strided_slice %445 {offsets = [0, 24], sizes = [1, 8], strides = [1, 1]} : vector<1x48xf32> to vector<1x8xf32>
    %452 = arith.maximumf %450, %451 : vector<1x8xf32>
    %c0_58 = arith.constant 0 : index
    %c56 = arith.constant 56 : index
    %453 = vector.load %arg13[%c0_58, %c56] : memref<2x72xf32, #tpu.memory_space<vmem>>, vector<1x8xf32>
    tpu.vector_store %arg13[%c0_58, %c56], %452 {strides = array<i32>} : memref<2x72xf32, #tpu.memory_space<vmem>>, vector<1x8xf32>,
    %454 = vector.extract_strided_slice %445 {offsets = [0, 32], sizes = [1, 8], strides = [1, 1]} : vector<1x48xf32> to vector<1x8xf32>
    %455 = vector.extract_strided_slice %445 {offsets = [0, 40], sizes = [1, 8], strides = [1, 1]} : vector<1x48xf32> to vector<1x8xf32>
    %456 = arith.maximumf %454, %455 : vector<1x8xf32>
    %c0_59 = arith.constant 0 : index
    %c64 = arith.constant 64 : index
    %457 = vector.load %arg13[%c0_59, %c64] : memref<2x72xf32, #tpu.memory_space<vmem>>, vector<1x8xf32>
    tpu.vector_store %arg13[%c0_59, %c64], %456 {strides = array<i32>} : memref<2x72xf32, #tpu.memory_space<vmem>>, vector<1x8xf32>,
    %458 = vector.extract_strided_slice %412 {offsets = [6, 0], sizes = [1, 48], strides = [1, 1]} : vector<12x48xf32> to vector<1x48xf32>
    %459 = vector.extract_strided_slice %412 {offsets = [7, 0], sizes = [1, 48], strides = [1, 1]} : vector<12x48xf32> to vector<1x48xf32>
    %460 = arith.maximumf %458, %459 : vector<1x48xf32>
    %461 = vector.extract_strided_slice %460 {offsets = [0, 0], sizes = [1, 8], strides = [1, 1]} : vector<1x48xf32> to vector<1x8xf32>
    %462 = vector.extract_strided_slice %460 {offsets = [0, 8], sizes = [1, 8], strides = [1, 1]} : vector<1x48xf32> to vector<1x8xf32>
    %463 = arith.maximumf %461, %462 : vector<1x8xf32>
    %c1_60 = arith.constant 1 : index
    %c0_61 = arith.constant 0 : index
    %464 = vector.load %arg13[%c1_60, %c0_61] : memref<2x72xf32, #tpu.memory_space<vmem>>, vector<1x8xf32>
    tpu.vector_store %arg13[%c1_60, %c0_61], %463 {strides = array<i32>} : memref<2x72xf32, #tpu.memory_space<vmem>>, vector<1x8xf32>,
    %465 = vector.extract_strided_slice %460 {offsets = [0, 16], sizes = [1, 8], strides = [1, 1]} : vector<1x48xf32> to vector<1x8xf32>
    %466 = vector.extract_strided_slice %460 {offsets = [0, 24], sizes = [1, 8], strides = [1, 1]} : vector<1x48xf32> to vector<1x8xf32>
    %467 = arith.maximumf %465, %466 : vector<1x8xf32>
    %c1_62 = arith.constant 1 : index
    %c8_63 = arith.constant 8 : index
    %468 = vector.load %arg13[%c1_62, %c8_63] : memref<2x72xf32, #tpu.memory_space<vmem>>, vector<1x8xf32>
    tpu.vector_store %arg13[%c1_62, %c8_63], %467 {strides = array<i32>} : memref<2x72xf32, #tpu.memory_space<vmem>>, vector<1x8xf32>,
    %469 = vector.extract_strided_slice %460 {offsets = [0, 32], sizes = [1, 8], strides = [1, 1]} : vector<1x48xf32> to vector<1x8xf32>
    %470 = vector.extract_strided_slice %460 {offsets = [0, 40], sizes = [1, 8], strides = [1, 1]} : vector<1x48xf32> to vector<1x8xf32>
    %471 = arith.maximumf %469, %470 : vector<1x8xf32>
    %c1_64 = arith.constant 1 : index
    %c16_65 = arith.constant 16 : index
    %472 = vector.load %arg13[%c1_64, %c16_65] : memref<2x72xf32, #tpu.memory_space<vmem>>, vector<1x8xf32>
    tpu.vector_store %arg13[%c1_64, %c16_65], %471 {strides = array<i32>} : memref<2x72xf32, #tpu.memory_space<vmem>>, vector<1x8xf32>,
    %473 = vector.extract_strided_slice %412 {offsets = [8, 0], sizes = [1, 48], strides = [1, 1]} : vector<12x48xf32> to vector<1x48xf32>
    %474 = vector.extract_strided_slice %412 {offsets = [9, 0], sizes = [1, 48], strides = [1, 1]} : vector<12x48xf32> to vector<1x48xf32>
    %475 = arith.maximumf %473, %474 : vector<1x48xf32>
    %476 = vector.extract_strided_slice %475 {offsets = [0, 0], sizes = [1, 8], strides = [1, 1]} : vector<1x48xf32> to vector<1x8xf32>
    %477 = vector.extract_strided_slice %475 {offsets = [0, 8], sizes = [1, 8], strides = [1, 1]} : vector<1x48xf32> to vector<1x8xf32>
    %478 = arith.maximumf %476, %477 : vector<1x8xf32>
    %c1_66 = arith.constant 1 : index
    %c24_67 = arith.constant 24 : index
    %479 = vector.load %arg13[%c1_66, %c24_67] : memref<2x72xf32, #tpu.memory_space<vmem>>, vector<1x8xf32>
    tpu.vector_store %arg13[%c1_66, %c24_67], %478 {strides = array<i32>} : memref<2x72xf32, #tpu.memory_space<vmem>>, vector<1x8xf32>,
    %480 = vector.extract_strided_slice %475 {offsets = [0, 16], sizes = [1, 8], strides = [1, 1]} : vector<1x48xf32> to vector<1x8xf32>
    %481 = vector.extract_strided_slice %475 {offsets = [0, 24], sizes = [1, 8], strides = [1, 1]} : vector<1x48xf32> to vector<1x8xf32>
    %482 = arith.maximumf %480, %481 : vector<1x8xf32>
    %c1_68 = arith.constant 1 : index
    %c32_69 = arith.constant 32 : index
    %483 = vector.load %arg13[%c1_68, %c32_69] : memref<2x72xf32, #tpu.memory_space<vmem>>, vector<1x8xf32>
    tpu.vector_store %arg13[%c1_68, %c32_69], %482 {strides = array<i32>} : memref<2x72xf32, #tpu.memory_space<vmem>>, vector<1x8xf32>,
    %484 = vector.extract_strided_slice %475 {offsets = [0, 32], sizes = [1, 8], strides = [1, 1]} : vector<1x48xf32> to vector<1x8xf32>
    %485 = vector.extract_strided_slice %475 {offsets = [0, 40], sizes = [1, 8], strides = [1, 1]} : vector<1x48xf32> to vector<1x8xf32>
    %486 = arith.maximumf %484, %485 : vector<1x8xf32>
    %c1_70 = arith.constant 1 : index
    %c40_71 = arith.constant 40 : index
    %487 = vector.load %arg13[%c1_70, %c40_71] : memref<2x72xf32, #tpu.memory_space<vmem>>, vector<1x8xf32>
    tpu.vector_store %arg13[%c1_70, %c40_71], %486 {strides = array<i32>} : memref<2x72xf32, #tpu.memory_space<vmem>>, vector<1x8xf32>,
    %488 = vector.extract_strided_slice %412 {offsets = [10, 0], sizes = [1, 48], strides = [1, 1]} : vector<12x48xf32> to vector<1x48xf32>
    %489 = vector.extract_strided_slice %412 {offsets = [11, 0], sizes = [1, 48], strides = [1, 1]} : vector<12x48xf32> to vector<1x48xf32>
    %490 = arith.maximumf %488, %489 : vector<1x48xf32>
    %491 = vector.extract_strided_slice %490 {offsets = [0, 0], sizes = [1, 8], strides = [1, 1]} : vector<1x48xf32> to vector<1x8xf32>
    %492 = vector.extract_strided_slice %490 {offsets = [0, 8], sizes = [1, 8], strides = [1, 1]} : vector<1x48xf32> to vector<1x8xf32>
    %493 = arith.maximumf %491, %492 : vector<1x8xf32>
    %c1_72 = arith.constant 1 : index
    %c48_73 = arith.constant 48 : index
    %494 = vector.load %arg13[%c1_72, %c48_73] : memref<2x72xf32, #tpu.memory_space<vmem>>, vector<1x8xf32>
    tpu.vector_store %arg13[%c1_72, %c48_73], %493 {strides = array<i32>} : memref<2x72xf32, #tpu.memory_space<vmem>>, vector<1x8xf32>,
    %495 = vector.extract_strided_slice %490 {offsets = [0, 16], sizes = [1, 8], strides = [1, 1]} : vector<1x48xf32> to vector<1x8xf32>
    %496 = vector.extract_strided_slice %490 {offsets = [0, 24], sizes = [1, 8], strides = [1, 1]} : vector<1x48xf32> to vector<1x8xf32>
    %497 = arith.maximumf %495, %496 : vector<1x8xf32>
    %c1_74 = arith.constant 1 : index
    %c56_75 = arith.constant 56 : index
    %498 = vector.load %arg13[%c1_74, %c56_75] : memref<2x72xf32, #tpu.memory_space<vmem>>, vector<1x8xf32>
    tpu.vector_store %arg13[%c1_74, %c56_75], %497 {strides = array<i32>} : memref<2x72xf32, #tpu.memory_space<vmem>>, vector<1x8xf32>,
    %499 = vector.extract_strided_slice %490 {offsets = [0, 32], sizes = [1, 8], strides = [1, 1]} : vector<1x48xf32> to vector<1x8xf32>
    %500 = vector.extract_strided_slice %490 {offsets = [0, 40], sizes = [1, 8], strides = [1, 1]} : vector<1x48xf32> to vector<1x8xf32>
    %501 = arith.maximumf %499, %500 : vector<1x8xf32>
    %c1_76 = arith.constant 1 : index
    %c64_77 = arith.constant 64 : index
    %502 = vector.load %arg13[%c1_76, %c64_77] : memref<2x72xf32, #tpu.memory_space<vmem>>, vector<1x8xf32>
    tpu.vector_store %arg13[%c1_76, %c64_77], %501 {strides = array<i32>} : memref<2x72xf32, #tpu.memory_space<vmem>>, vector<1x8xf32>,
    %c0_78 = arith.constant 0 : index
    %c0_79 = arith.constant 0 : index
    %503 = vector.load %arg13[%c0_78, %c0_79] : memref<2x72xf32, #tpu.memory_space<vmem>>, vector<2x72xf32>
    %504 = arith.truncf %503 : vector<2x72xf32> to vector<2x72xbf16>
    %c0_80 = arith.constant 0 : index
    %c0_81 = arith.constant 0 : index
    %505 = vector.load %arg5[%c0_80, %c0_81] : memref<72x32xbf16, #tpu.memory_space<vmem>>, vector<72x32xbf16>
    %cst_82 = arith.constant dense<0.000000e+00> : vector<2x32xf32>
    %506 = tpu.matmul %504, %505, %cst_82 {dimension_numbers = #tpu.dot_dimension_numbers<[1], [0], [0], [1], [0, 0, 1, 1], [], []>} : vector<2x72xbf16>, vector<72x32xbf16>, vector<2x32xf32> -> vector<2x32xf32>
    %c0_83 = arith.constant 0 : index
    %c0_84 = arith.constant 0 : index
    %507 = vector.load %arg6[%c0_83, %c0_84] : memref<1x32xf32, #tpu.memory_space<vmem>>, vector<1x32xf32>
    %508 = vector.broadcast %507 : vector<1x32xf32> to vector<2x32xf32>
    %509 = arith.addf %506, %508 : vector<2x32xf32>
    %cst_85 = arith.constant 0.000000e+00 : f32
    %510 = vector.broadcast %cst_85 : f32 to vector<2x32xf32>
    %511 = arith.maximumf %509, %510 : vector<2x32xf32>
    %512 = arith.truncf %511 : vector<2x32xf32> to vector<2x32xbf16>
    %c0_86 = arith.constant 0 : index
    %c0_87 = arith.constant 0 : index
    %513 = vector.load %arg7[%c0_86, %c0_87] : memref<32x16xbf16, #tpu.memory_space<vmem>>, vector<32x16xbf16>
    %cst_88 = arith.constant dense<0.000000e+00> : vector<2x16xf32>
    %514 = tpu.matmul %512, %513, %cst_88 {dimension_numbers = #tpu.dot_dimension_numbers<[1], [0], [0], [1], [0, 0, 1, 1], [], []>} : vector<2x32xbf16>, vector<32x16xbf16>, vector<2x16xf32> -> vector<2x16xf32>
    %c0_89 = arith.constant 0 : index
    %c0_90 = arith.constant 0 : index
    %515 = vector.load %arg8[%c0_89, %c0_90] : memref<1x16xf32, #tpu.memory_space<vmem>>, vector<1x16xf32>
    %516 = vector.broadcast %515 : vector<1x16xf32> to vector<2x16xf32>
    %517 = arith.addf %514, %516 : vector<2x16xf32>
    %cst_91 = arith.constant 0.000000e+00 : f32
    %518 = vector.broadcast %cst_91 : f32 to vector<2x16xf32>
    %519 = arith.maximumf %517, %518 : vector<2x16xf32>
    %520 = arith.truncf %519 : vector<2x16xf32> to vector<2x16xbf16>
    %c0_92 = arith.constant 0 : index
    %c0_93 = arith.constant 0 : index
    %521 = vector.load %arg9[%c0_92, %c0_93] : memref<16x128xbf16, #tpu.memory_space<vmem>>, vector<16x128xbf16>
    %cst_94 = arith.constant dense<0.000000e+00> : vector<2x128xf32>
    %522 = tpu.matmul %520, %521, %cst_94 {dimension_numbers = #tpu.dot_dimension_numbers<[1], [0], [0], [1], [0, 0, 1, 1], [], []>} : vector<2x16xbf16>, vector<16x128xbf16>, vector<2x128xf32> -> vector<2x128xf32>
    %c0_95 = arith.constant 0 : index
    %c0_96 = arith.constant 0 : index
    %523 = vector.load %arg10[%c0_95, %c0_96] : memref<1x128xf32, #tpu.memory_space<vmem>>, vector<1x128xf32>
    %524 = vector.broadcast %523 : vector<1x128xf32> to vector<2x128xf32>
    %525 = arith.addf %522, %524 : vector<2x128xf32>
    %c0_97 = arith.constant 0 : index
    %c0_98 = arith.constant 0 : index
    %526 = vector.load %arg11[%c0_97, %c0_98] : memref<2x128xf32, #tpu.memory_space<vmem>>, vector<2x128xf32>
    tpu.vector_store %arg11[%c0_97, %c0_98], %525 {strides = array<i32>} : memref<2x128xf32, #tpu.memory_space<vmem>>, vector<2x128xf32>,
    return
  }
}

</mosaic_0001>

<bundles_post_ra>
// kernel: tpu_custom_call.1
= control target key start
LH: loop header
LB: loop body
LE: loop exit
PB: predicated region body
PF: predicated region fallthrough
CT: control target
= control target key end

     0   :  { %16 = vsyncpa [#allocation5], 0  ;;  %s1348_s0 = inlined_call_operand.hbm [shape: f32[32,64], index: 0, kind: input, shape index: {}]   ;;  %s1349_s1 = inlined_call_operand.vmem [shape: bf16[3,64,112], index: 1, kind: input, shape index: {}]   ;;  %s1350_s2 = inlined_call_operand.vmem [shape: f32[1,112], index: 2, kind: input, shape index: {}]   ;;  %s1351_s3 = inlined_call_operand.vmem [shape: bf16[2,56,48], index: 3, kind: input, shape index: {}]   ;;  %s1352_s4 = inlined_call_operand.vmem [shape: f32[1,48], index: 4, kind: input, shape index: {}]   ;;  %s1353_s5 = inlined_call_operand.vmem [shape: bf16[72,32], index: 5, kind: input, shape index: {}]   ;;  %s1354_s6 = inlined_call_operand.vmem [shape: f32[1,32], index: 6, kind: input, shape index: {}]   ;;  %s1355_s7 = inlined_call_operand.vmem [shape: bf16[32,16], index: 7, kind: input, shape index: {}]   ;;  %s1356_s8 = inlined_call_operand.vmem [shape: f32[1,16], index: 8, kind: input, shape index: {}]   ;;  %s1357_s9 = inlined_call_operand.vmem [shape: bf16[16,128], index: 9, kind: input, shape index: {}]   ;;  %s1358_s10 = inlined_call_operand.vmem [shape: f32[1,128], index: 10, kind: input, shape index: {}]   ;;  %s1359_s11 = inlined_call_operand.hbm [shape: f32[2,128], index: 11, kind: output, shape index: {}]  }
   0x1   :  { %17 = vsyncpa [#allocation6], 0  ;;  %s22_s19 = sshll.u32 %s1348_s0, 4  ;;  %s1052_s20 = smov [#allocation4]   ;;  %s23_s19 = int_to_ptr.hbm [resolvable:$true] %s22_s19 }
   0x2   :  { %s24_s21 = sshll.u32 %s1052_s20, 4  ;;  %s1053_s22 = smov 128   ;;  %s25_s21 = int_to_ptr.vmem [resolvable:$true] %s24_s21 }
   0x3   :  { %s1054_s23 = smov 8  }
   0x4   :  { %30 = dma.hbm_to_vmem [thread:$0]  %s23_s19, 512, %s25_s21, [#allocation5], %s1053_s22, %s1053_s22, %s1054_s23  }
   0x5   :  { %1048 = dma.done.wait [#allocation5], 512  }
   0x6   :  { %1049 = vsyncadd [#allocation5], 4294966784  ;;  %v962_v0 = vld [vmem:[%s1349_s1 + $0x38] sm:$0xff]  ;;  %v961_v3 = vld [vmem:[%s1349_s1 + $0x30] sm:$0xff]  ;;  %vm62_vm0 = vcmask 1045504   ;;  %vm82_vm1 = vcmask 1046528  }
   0x7   :  { %v958_v1 = vld [vmem:[%s1349_s1 + $0x18] sm:$0xff]  ;;  %142 = vmatpush.bf16.msra.mxu0 %v962_v0  ;;  %v957_v4 = vld [vmem:[%s1349_s1 + $0x10] sm:$0xff]  ;;  %v58_v8 = vld [vmem:[#allocation4 + $0x10] sm:$0xff]  ;;  %vm131_vm2 = vcmask 523264   ;;  %vm88_vm3 = vcmask 1044480   ;;  %vm211_vm4 = vcmask 1043456  }
   0x8   :  { %v966_v2 = vld [vmem:[%s1349_s1 + $0x58] sm:$0xff]  ;;  %191 = vmatpush.bf16.msra.mxu1 %v958_v1  ;;  %v965_v5 = vld [vmem:[%s1349_s1 + $0x50] sm:$0xff]  ;;  %v960_v9 = vld [vmem:[%s1349_s1 + $0x28] sm:$0xff]  ;;  %v89_v14 = vrot.slane %v58_v8, 3  ;;  %v63_v15 = vrot.slane %v58_v8, 2  ;;  %v212_v18 = vrot.slane %v58_v8, 4 }
   0x9   :  { %264 = vmatpush.bf16.msra.mxu2 %v966_v2  ;;  %v56_v6 = vld [vmem:[#allocation4] sm:$0xff]  ;;  %v57_v7 = vld [vmem:[#allocation4 + $0x8] sm:$0xff]  ;;  %v956_v10 = vld [vmem:[%s1349_s1 + $0x8] sm:$0xff]  ;;  %s1055_s29 = smov 120   ;;  %s1057_s30 = smov 112   ;;  %vm323_vm5 = vcmask 64512  }
   0xa   :  { %v964_v11 = vld [vmem:[%s1349_s1 + $0x48] sm:$0xff]  ;;  %v83_v12 = vrot.slane %v56_v6, 1  ;;  %v84_v13 = vrot.slane %v57_v7, 1  ;;  %v206_v16 = vrot.slane %v56_v6, 2  ;;  %v207_v17 = vrot.slane %v57_v7, 2  ;;  %v959_v19 = vld [vmem:[%s1349_s1 + $0x20] sm:$0xff] }
   0xb   :  { %143 = vmatpush.bf16.msra.mxu0 %v961_v3  ;;  %v955_v20 = vld [vmem:[%s1349_s1] sm:$0xff]  ;;  %v69_v23 = vsel %vm62_vm0, %v57_v7, %v63_v15  ;;  %v59_v30 = vld [vmem:[#allocation4 + $0x18] sm:$0xff]  ;;  %s1058_s12 = smov 88   ;;  %s1059_s13 = smov 96   ;;  %vm325_vm6 = vcmask 130048   ;;  %vm327_vm7 = vcmask 195584  }
   0xc   :  { %192 = vmatpush.bf16.msra.mxu1 %v957_v4  ;;  %v85_v21 = vsel %vm82_vm1, %v83_v12, %v84_v13  ;;  %v95_v22 = vsel %vm62_vm0, %v84_v13, %v89_v14  ;;  %v963_v24 = vld [vmem:[%s1349_s1 + $0x40] sm:$0xff]  ;;  %v208_v25 = vsel %vm62_vm0, %v206_v16, %v207_v17  ;;  %v218_v26 = vsel %vm62_vm0, %v207_v17, %v212_v18  ;;  %s1060_s14 = smov 80   ;;  %s1064_s15 = smov 40  }
   0xd   :  { %265 = vmatpush.bf16.msra.mxu2 %v965_v5  ;;  %v96_v27 = vpack.c.bf16 %v95_v22, %v85_v21  ;;  %v70_v28 = vpack.c.bf16 %v69_v23, %v56_v6  ;;  %v219_v29 = vpack.c.bf16 %v218_v26, %v208_v25  ;;  %v90_v31 = vrot.slane %v59_v30, 3  ;;  %v995_v43 = vld [vmem:[%s1350_s2] ss:$0 sm:$0xff]  ;;  %s1056_s2 = smov 104  }
   0xe   :  { %v64_v32 = vrot.slane %v59_v30, 2  ;;  %v213_v33 = vrot.slane %v59_v30, 4  ;;  %vm329_vm8 = vcmask 261120   ;;  %vm331_vm9 = vcmask 326656  }
   0xf   :  { %144 = vmatpush.bf16.msra.mxu0 %v960_v9  ;;  %v91_v34 = vsel %vm88_vm3, %v89_v14, %v90_v31  ;;  %vm333_vm10 = vcmask 392192   ;;  %vm335_vm11 = vcmask 450560   ;;  %vm337_vm12 = vcmask 452610  }
  0x10   :  { %193 = vmatpush.bf16.msra.mxu1 %v956_v10  ;;  %v65_v35 = vsel %vm62_vm0, %v63_v15, %v64_v32  ;;  %v214_v36 = vsel %vm211_vm4, %v212_v18, %v213_v33  ;;  %v97_v37 = vpack.c.bf16 %v90_v31, %v91_v34  ;;  %vm339_vm13 = vcmask 454660  }
  0x11   :  { %266 = vmatpush.bf16.msra.mxu2 %v964_v11  ;;  %v71_v38 = vpack.c.bf16 %v64_v32, %v65_v35  ;;  %v220_v39 = vpack.c.bf16 %v213_v33, %v214_v36  ;;  %v897_v33 = vld [vmem:[%s1351_s3 + $0x34] sm:$0xf]  ;;  %vm341_vm14 = vcmask 456710   ;;  %vm505_vm15 = vcmask 457728  }
  0x12   :  { %v497_v34 = vunpack.c.l.b16 %v897_v33  ;;  %vm627_vm1 = vcmask 63494   ;;  %vm595_vm3 = vcmask 188544  }
  0x13   :  { %145 = vmatpush.bf16.msra.mxu0 %v959_v19 }
  0x14   :  { %194 = vmatpush.bf16.msra.mxu1 %v955_v20 }
  0x15   :  { %267 = vmatpush.bf16.msra.mxu2 %v963_v24 }
  0x16   :  { %845 = vmatmul.msk.bf16.vlgmr.msra.gmra.mxu0 %vm131_vm2, %v96_v27 }
  0x17   :  { %863 = vmatmul.msk.bf16.vlgmr.msra.gmra.mxu1 %vm131_vm2, %v70_v28 }
  0x18   :  { %889 = vmatmul.msk.bf16.vlgmr.msra.gmra.mxu2 %vm131_vm2, %v219_v29 }
  0x26   :  { %846 = vmatmul.msk.bf16.gmra.mxu0 %vm131_vm2, %v97_v37  ;;  %v501_v37 = vpack.c.b16 %v497_v34, %v497_v34 }
  0x27   :  { %864 = vmatmul.msk.bf16.gmra.mxu1 %vm131_vm2, %v71_v38 }
  0x28   :  { %890 = vmatmul.msk.bf16.gmra.mxu2 %vm131_vm2, %v220_v39  ;;  %v510_v39 = vsel %vm211_vm4, %v501_v37, 0  ;;  %vm590_vm2 = vcmask 122944  }
  0x29   :  { %516 = vmatpush.bf16.msra.mxu3 %v510_v39 }
  0x93   :  { %v147_v40 = vpop.f32.mrf.mxu0 }
  0x94   :  { %v196_v41 = vpop.f32.mrf.mxu1 }
  0x95   :  { %v197_v42 = vadd.f32 %v196_v41, %v147_v40  ;;  %v972_v40 = vld [vmem:[%s1351_s3 + $0x2c] sm:$0xff]  ;;  %v971_v41 = vld [vmem:[%s1351_s3 + $0x24] sm:$0xff] }
  0x96   :  { %517 = vmatpush.bf16.msra.mxu3 %v972_v40 }
  0x9a   :  { %518 = vmatpush.bf16.msra.mxu3 %v971_v41 }
  0x9b   :  { %v269_v44 = vpop.f32.mrf.mxu2  ;;  %v149_v46 = vpop.f32.mrf.mxu0 }
  0x9c   :  { %v279_v45 = vadd.f32 %v269_v44, %v197_v42  ;;  %v198_v47 = vpop.f32.mrf.mxu1 }
  0x9d   :  { %v199_v50 = vadd.f32 %v198_v47, %v149_v46 }
  0x9e   :  { %v287_v48 = vadd.f32 %v995_v43, %v279_v45 }
  0xa0   :  { %v291_v49 = vmax.f32 %v287_v48, 0.0 }
  0xa2   :  { %v296_v51 = vrot.slane %v291_v49, 1 }
  0xa3   :  { %v271_v52 = vpop.f32.mrf.mxu2  ;;  %v152_v55 = vpop.f32.mrf.mxu0 }
  0xa4   :  { %v280_v53 = vadd.f32 %v271_v52, %v199_v50  ;;  %v298_v54 = vmax.f32 %v291_v49, %v296_v51  ;;  %v201_v56 = vpop.f32.mrf.mxu1  ;;  %v970_v49 = vld [vmem:[%s1351_s3 + $0x1c] sm:$0xff]  ;;  %v468_v52 = vld [vmem:[%s1351_s3 + $0x18] sm:$0xf] }
  0xa5   :  { %v202_v59 = vadd.f32 %v201_v56, %v152_v55  ;;  %519 = vmatpush.bf16.msra.mxu3 %v970_v49  ;;  %v539_v56 = vunpack.c.l.b16 %v468_v52  ;;  %v976_v52 = vld [vmem:[%s1353_s5 + $0x18] sm:$0xff] }
  0xa6   :  { %v288_v57 = vadd.f32 %v995_v43, %v280_v53  ;;  %300 = vrot.lane.b32.xlu1 %v298_v54, %s1055_s29 }
  0xa8   :  { %v292_v58 = vmax.f32 %v288_v57, 0.0 }
  0xaa   :  { %v344_v60 = vrot.slane %v292_v58, 1 }
  0xab   :  { %v274_v61 = vpop.f32.mrf.mxu2  ;;  %v154_v0 = vpop.f32.mrf.mxu0 }
  0xac   :  { %v281_v62 = vadd.f32 %v274_v61, %v202_v59  ;;  %v346_v63 = vmax.f32 %v292_v58, %v344_v60  ;;  %v203_v1 = vpop.f32.mrf.mxu1  ;;  %v543_v61 = vpack.c.b16 %v539_v56, %v539_v56 }
  0xad   :  { %v204_v4 = vadd.f32 %v203_v1, %v154_v0 }
  0xae   :  { %v289_v2 = vadd.f32 %v995_v43, %v281_v62  ;;  %348 = vrot.lane.b32.xlu1 %v346_v63, %s1055_s29  ;;  %v551_v1 = vsel %vm211_vm4, %v543_v61, 0 }
  0xaf   :  { %557 = vmatpush.bf16.msrb.mxu3 %v551_v1 }
  0xb0   :  { %v293_v3 = vmax.f32 %v289_v2, 0.0 }
  0xb2   :  { %v382_v5 = vrot.slane %v293_v3, 1 }
  0xb3   :  { %v276_v6 = vpop.f32.mrf.mxu2 }
  0xb4   :  { %v282_v7 = vadd.f32 %v276_v6, %v204_v4  ;;  %v384_v8 = vmax.f32 %v293_v3, %v382_v5  ;;  %v969_v3 = vld [vmem:[%s1351_s3 + $0x10] sm:$0xff] }
  0xb5   :  { %558 = vmatpush.bf16.msrb.mxu3 %v969_v3 }
  0xb6   :  { %v290_v9 = vadd.f32 %v995_v43, %v282_v7  ;;  %386 = vrot.lane.b32.xlu0 %v384_v8, %s1055_s29 }
  0xb8   :  { %v294_v10 = vmax.f32 %v290_v9, 0.0 }
  0xba   :  { %v420_v11 = vrot.slane %v294_v10, 1 }
  0xbc   :  { %v422_v12 = vmax.f32 %v294_v10, %v420_v11 }
  0xbe   :  { %424 = vrot.lane.b32.xlu0 %v422_v12, %s1055_s29 }
 0x118   :  { %v301_v13 = vpop.permute.xlu1 %300 }
 0x119   :  { %v1186_v14 = vmax.f32 %v298_v54, %v301_v13  ;;  %v967_v13 = vld [vmem:[%s1351_s3] sm:$0xff] }
 0x11b   :  { %311 = vrot.lane.b32.xlu1 %v1186_v14, %s1056_s2  ;;  %308 = vrot.lane.b32.xlu0 %v1186_v14, %s1057_s30 }
 0x11c   :  { %305 = vrot.lane.b32.xlu2 %v1186_v14, %s1055_s29 }
 0x120   :  { %v349_v15 = vpop.permute.xlu1 %348 }
 0x121   :  { %v1194_v16 = vmax.f32 %v346_v63, %v349_v15 }
 0x123   :  { %317 = vrot.lane.b32.xlu0 %v1186_v14, %s1058_s12  ;;  %356 = vrot.lane.b32.xlu1 %v1194_v16, %s1057_s30 }
 0x124   :  { %314 = vrot.lane.b32.xlu2 %v1186_v14, %s1059_s13 }
 0x128   :  { %v387_v17 = vpop.permute.xlu0 %386 }
 0x129   :  { %v389_v18 = vmax.f32 %v384_v8, %v387_v17  ;;  %v968_v8 = vld [vmem:[%s1351_s3 + $0x8] sm:$0xff] }
 0x12a   :  { %559 = vmatpush.bf16.msrb.mxu3 %v968_v8 }
 0x12b   :  { %397 = vrot.lane.b32.xlu1 %v389_v18, %s1056_s2  ;;  %353 = vrot.lane.b32.xlu0 %v1194_v16, %s1055_s29 }
 0x12c   :  { %359 = vrot.lane.b32.xlu2 %v1194_v16, %s1056_s2 }
 0x12e   :  { %560 = vmatpush.bf16.msrb.mxu3 %v967_v13 }
 0x130   :  { %v425_v19 = vpop.permute.xlu0 %424 }
 0x131   :  { %v1207_v20 = vmax.f32 %v422_v12, %v425_v19 }
 0x133   :  { %406 = vrot.lane.b32.xlu1 %v389_v18, %s1060_s14  ;;  %362 = vrot.lane.b32.xlu0 %v1194_v16, %s1059_s13 }
 0x134   :  { %391 = vrot.lane.b32.xlu2 %v389_v18, %s1055_s29 }
 0x13b   :  { %432 = vrot.lane.b32.xlu1 %v1207_v20, %s1057_s30  ;;  %394 = vrot.lane.b32.xlu0 %v389_v18, %s1057_s30 }
 0x13c   :  { %400 = vrot.lane.b32.xlu2 %v389_v18, %s1059_s13 }
 0x143   :  { %441 = vrot.lane.b32.xlu1 %v1207_v20, %s1058_s12  ;;  %403 = vrot.lane.b32.xlu0 %v389_v18, %s1058_s12 }
 0x144   :  { %429 = vrot.lane.b32.xlu2 %v1207_v20, %s1055_s29 }
 0x14b   :  { %365 = vrot.lane.b32.xlu1 %v1194_v16, %s1058_s12  ;;  %438 = vrot.lane.b32.xlu0 %v1207_v20, %s1059_s13  ;;  %s1062_s13 = smov 48   ;;  %s1066_s12 = smov [#allocation7]  }
 0x14c   :  { %435 = vrot.lane.b32.xlu2 %v1207_v20, %s1056_s2 }
 0x153   :  { %368 = vrot.lane.b32.xlu0 %v1194_v16, %s1060_s14 }
 0x154   :  { %444 = vrot.lane.b32.xlu2 %v1207_v20, %s1060_s14 }
 0x15c   :  { %320 = vrot.lane.b32.xlu2 %v1186_v14, %s1060_s14  ;;  %s1063_s14 = smov 16  }
 0x176   :  { %v306_v21 = vpop.permute.xlu2 %305 }
 0x177   :  { %v324_v43 = vsel %vm323_vm5, %v1186_v14, %v306_v21 }
 0x17e   :  { %v315_v22 = vpop.permute.xlu2 %314 }
 0x186   :  { %v1222_v23 = vpop.permute.xlu2 %359 }
 0x18d   :  { %v309_v24 = vpop.permute.xlu0 %308  ;;  %v312_v25 = vpop.permute.xlu1 %311 }
 0x18e   :  { %v392_v26 = vpop.permute.xlu2 %391  ;;  %v326_v47 = vsel %vm325_vm6, %v324_v43, %v309_v24 }
 0x18f   :  { %v409_v44 = vsel %vm323_vm5, %v389_v18, %v392_v26  ;;  %v328_v50 = vsel %vm327_vm7, %v326_v47, %v312_v25 }
 0x190   :  { %v330_v53 = vsel %vm329_vm8, %v328_v50, %v315_v22 }
 0x195   :  { %v318_v27 = vpop.permute.xlu0 %317  ;;  %v1224_v28 = vpop.permute.xlu1 %356 }
 0x196   :  { %v401_v29 = vpop.permute.xlu2 %400  ;;  %v332_v57 = vsel %vm331_vm9, %v330_v53, %v318_v27  ;;  %v975_v53 = vld [vmem:[%s1353_s5 + $0x10] sm:$0xff] }
 0x19d   :  { %v354_v30 = vpop.permute.xlu0 %353  ;;  %v398_v31 = vpop.permute.xlu1 %397 }
 0x19e   :  { %v430_v32 = vpop.permute.xlu2 %429  ;;  %v371_v4 = vsel %vm323_vm5, %v1194_v16, %v354_v30 }
 0x19f   :  { %v447_v63 = vsel %vm323_vm5, %v1207_v20, %v430_v32  ;;  %v372_v10 = vsel %vm325_vm6, %v371_v4, %v1224_v28  ;;  %vm600_vm5 = vcmask 256194  }
 0x1a0   :  { %v373_v14 = vsel %vm327_vm7, %v372_v10, %v1222_v23  ;;  %v979_v10 = vld [vmem:[%s1357_s9] sm:$0xff] }
 0x1a1   :  { %797 = vmatpush.bf16.msrb.mxu2 %v979_v10 }
 0x1a5   :  { %v1229_v35 = vpop.permute.xlu0 %362  ;;  %v407_v36 = vpop.permute.xlu1 %406 }
 0x1a6   :  { %v436_v38 = vpop.permute.xlu2 %435  ;;  %v374_v15 = vsel %vm329_vm8, %v373_v14, %v1229_v35 }
 0x1ad   :  { %v395_v42 = vpop.permute.xlu0 %394  ;;  %v433_v46 = vpop.permute.xlu1 %432 }
 0x1ae   :  { %v445_v45 = vpop.permute.xlu2 %444  ;;  %v410_v48 = vsel %vm325_vm6, %v409_v44, %v395_v42  ;;  %v448_v2 = vsel %vm325_vm6, %v447_v63, %v433_v46  ;;  %v977_v63 = vld [vmem:[%s1355_s7] sm:$0xff] }
 0x1af   :  { %v411_v51 = vsel %vm327_vm7, %v410_v48, %v398_v31  ;;  %v449_v6 = vsel %vm327_vm7, %v448_v2, %v436_v38  ;;  %v996_v31 = vld [vmem:[%s1352_s4] ss:$0 sm:$0xff]  ;;  %s1061_s4 = smov 24   ;;  %vm631_vm7 = vcmask 194694  }
 0x1b0   :  { %v412_v55 = vsel %vm329_vm8, %v411_v51, %v401_v29  ;;  %v683_v48 = vld [vmem:[%s1353_s5 + $0x20] sm:$0xf] }
 0x1b1   :  { %v705_v49 = vunpack.c.l.b16 %v683_v48 }
 0x1b3   :  { %v710_v50 = vpack.c.b16 %v705_v49, %v705_v49 }
 0x1b5   :  { %v404_v54 = vpop.permute.xlu0 %403  ;;  %v442_v62 = vpop.permute.xlu1 %441  ;;  %v720_v51 = vsel %vm211_vm4, %v710_v50, 0  ;;  %vm629_vm4 = vcmask 129094  }
 0x1b6   :  { %v321_v58 = vpop.permute.xlu2 %320  ;;  %v413_v59 = vsel %vm331_vm9, %v412_v55, %v404_v54  ;;  %725 = vmatpush.bf16.msrb.mxu0 %v720_v51  ;;  %v974_v54 = vld [vmem:[%s1353_s5 + $0x8] sm:$0xff] }
 0x1b7   :  { %v334_v60 = vsel %vm333_vm10, %v332_v57, %v321_v58  ;;  %v414_v0 = vsel %vm333_vm10, %v413_v59, %v407_v36  ;;  %v973_v58 = vld [vmem:[%s1353_s5] sm:$0xff] }
 0x1b8   :  { %336 = vst.msk [vmem:[#allocation2] sm:$0x1] %vm335_vm11, %v334_v60 }
 0x1b9   :  { %338 = vst.msk [vmem:[#allocation2 - $0x1] sm:$0x4] %vm337_vm12, %v334_v60 }
 0x1ba   :  { %340 = vst.msk [vmem:[#allocation2 - $0x2] sm:$0x10] %vm339_vm13, %v334_v60  ;;  %726 = vmatpush.bf16.msrb.mxu0 %v976_v52 }
 0x1bb   :  { %342 = vst.msk [vmem:[#allocation2 - $0x3] sm:$0x40] %vm341_vm14, %v334_v60 }
 0x1bc   :  { %415 = vst.msk [vmem:[#allocation2 + $0x8] sm:$0x1] %vm335_vm11, %v414_v0 }
 0x1bd   :  { %416 = vst.msk [vmem:[#allocation2 + $0x7] sm:$0x4] %vm337_vm12, %v414_v0  ;;  %v439_v5 = vpop.permute.xlu0 %438  ;;  %v366_v12 = vpop.permute.xlu1 %365 }
 0x1be   :  { %417 = vst.msk [vmem:[#allocation2 + $0x6] sm:$0x10] %vm339_vm13, %v414_v0  ;;  %v450_v7 = vsel %vm329_vm8, %v449_v6, %v439_v5  ;;  %v375_v16 = vsel %vm331_vm9, %v374_v15, %v366_v12  ;;  %727 = vmatpush.bf16.msrb.mxu0 %v975_v53 }
 0x1bf   :  { %418 = vst.msk [vmem:[#allocation2 + $0x5] sm:$0x40] %vm341_vm14, %v414_v0  ;;  %v451_v9 = vsel %vm331_vm9, %v450_v7, %v442_v62  ;;  %vm605_vm9 = vcmask 321794   ;;  %v978_v62 = vld [vmem:[%s1355_s7 + $0x8] sm:$0xff] }
 0x1c0   :  { %v452_v11 = vsel %vm333_vm10, %v451_v9, %v445_v45  ;;  %766 = vmatpush.bf16.msrb.mxu1 %v978_v62 }
 0x1c1   :  { %453 = vst.msk [vmem:[#allocation2 + $0xc] sm:$0x1] %vm335_vm11, %v452_v11 }
 0x1c2   :  { %454 = vst.msk [vmem:[#allocation2 + $0xb] sm:$0x4] %vm337_vm12, %v452_v11  ;;  %728 = vmatpush.bf16.msrb.mxu0 %v974_v54  ;;  %v997_v11 = vld [vmem:[%s1354_s6] ss:$0 sm:$0xff] }
 0x1c4   :  { %767 = vmatpush.bf16.msrb.mxu1 %v977_v63 }
 0x1c5   :  { %v369_v17 = vpop.permute.xlu0 %368 }
 0x1c6   :  { %v376_v18 = vsel %vm333_vm10, %v375_v16, %v369_v17  ;;  %729 = vmatpush.bf16.msrb.mxu0 %v973_v58  ;;  %vm610_vm10 = vcmask 387394   ;;  %v998_v17 = vld [vmem:[%s1356_s8] ss:$0 sm:$0xff] }
 0x1c7   :  { %377 = vst.msk [vmem:[#allocation2 + $0x4] sm:$0x1] %vm335_vm11, %v376_v18  ;;  %vm615_vm11 = vcmask 455044  }
 0x1c8   :  { %378 = vst.msk [vmem:[#allocation2 + $0x3] sm:$0x4] %vm337_vm12, %v376_v18  ;;  %vm620_vm12 = vcmask 520644  }
 0x1c9   :  { %379 = vst.msk [vmem:[#allocation2 + $0x2] sm:$0x10] %vm339_vm13, %v376_v18  ;;  %v470_v19 = vld [vmem:[#allocation2 + $0x8] sm:$0x3f]  ;;  %vm646_vm13 = vcmask 254144  }
 0x1ca   :  { %380 = vst.msk [vmem:[#allocation2 + $0x1] sm:$0x40] %vm341_vm14, %v376_v18  ;;  %v472_v20 = vrot.slane %v470_v19, 2  ;;  %vm651_vm14 = vcmask 319744  }
 0x1cf   :  { %v455_v26 = vld [vmem:[#allocation2] sm:$0x3f] }
 0x1d0   :  { %v469_v21 = vld [vmem:[#allocation2 + $0x1] sm:$0x3f] }
 0x1d1   :  { %v474_v22 = vsel %vm62_vm0, %v469_v21, %v472_v20  ;;  %v456_v24 = vld [vmem:[#allocation2 + $0x7] sm:$0x3f] }
 0x1d2   :  { %v475_v23 = vpack.c.bf16 %v472_v20, %v474_v22  ;;  %v458_v25 = vrot.slane %v456_v24, 2 }
 0x1d4   :  { %910 = vmatmul.msk.bf16.vlgmr.msra.gmra.mxu3 %vm505_vm15, %v475_v23  ;;  %v460_v27 = vsel %vm62_vm0, %v455_v26, %v458_v25  ;;  %vm584_vm0 = vcmask 57344   ;;  %v999_v23 = vld [vmem:[%s1358_s10] ss:$0 sm:$0xff] }
 0x1d5   :  { %v461_v28 = vpack.c.bf16 %v458_v25, %v460_v27 }
 0x1e4   :  { %923 = vmatmul.msk.bf16.vlgmr.msrb.gmra.mxu3 %vm505_vm15, %v461_v28  ;;  %vm656_vm15 = vcmask 385344  }
 0x257   :  { %v521_v29 = vpop.f32.mrf.mxu3 }
 0x25f   :  { %v523_v30 = vpop.f32.mrf.mxu3 }
 0x267   :  { %v562_v32 = vpop.f32.mrf.mxu3 }
 0x268   :  { %v563_v33 = vadd.f32 %v562_v32, %v521_v29 }
 0x26a   :  { %v571_v34 = vadd.f32 %v996_v31, %v563_v33 }
 0x26c   :  { %v573_v35 = vmax.f32 %v571_v34, 0.0 }
 0x26e   :  { %v576_v36 = vrot.slane %v573_v35, 1 }
 0x26f   :  { %v564_v37 = vpop.f32.mrf.mxu3 }
 0x270   :  { %v565_v38 = vadd.f32 %v564_v37, %v523_v30  ;;  %v578_v39 = vmax.f32 %v573_v35, %v576_v36 }
 0x272   :  { %v572_v40 = vadd.f32 %v996_v31, %v565_v38  ;;  %580 = vrot.lane.b32.xlu1 %v578_v39, %s1055_s29 }
 0x274   :  { %v574_v41 = vmax.f32 %v572_v40, 0.0 }
 0x276   :  { %v634_v42 = vrot.slane %v574_v41, 1 }
 0x278   :  { %v636_v43 = vmax.f32 %v574_v41, %v634_v42 }
 0x27a   :  { %638 = vrot.lane.b32.xlu2 %v636_v43, %s1055_s29 }
 0x2d4   :  { %v639_v46 = vpop.permute.xlu2 %638 }
 0x2d5   :  { %v641_v47 = vmax.f32 %v636_v43, %v639_v46 }
 0x2e4   :  { %v581_v44 = vpop.permute.xlu1 %580 }
 0x2e5   :  { %v583_v45 = vmax.f32 %v578_v39, %v581_v44 }
 0x2e7   :  { %597 = vrot.lane.b32.xlu2 %v583_v45, %s1061_s4  ;;  %592 = vrot.lane.b32.xlu1 %v583_v45, %s1057_s30  ;;  %585 = vst.msk [vmem:[#allocation3] sm:$0x1] %vm584_vm0, %v583_v45  ;;  %s1065_s30 = smov 32   ;;  %vm661_vm0 = vcmask 452994  }
 0x2e8   :  { %587 = vrot.lane.b32.xlu0 %v583_v45, %s1055_s29  ;;  %628 = vst.msk [vmem:[#allocation3 - $0x5] sm:$0x40] %vm627_vm1, %v583_v45  ;;  %vm666_vm1 = vcmask 518594  }
 0x2ef   :  { %612 = vrot.lane.b32.xlu2 %v583_v45, %s1062_s13  ;;  %602 = vrot.lane.b32.xlu1 %v583_v45, %s1063_s14 }
 0x2f0   :  { %607 = vrot.lane.b32.xlu0 %v583_v45, %s1054_s23 }
 0x2f7   :  { %648 = vrot.lane.b32.xlu2 %v641_v47, %s1063_s14  ;;  %617 = vrot.lane.b32.xlu1 %v583_v45, %s1064_s15 }
 0x2f8   :  { %643 = vrot.lane.b32.xlu0 %v641_v47, %s1061_s4  ;;  %s809_s4 = sshll.u32 %s1066_s12, 4  ;;  %s810_s4 = int_to_ptr.vmem [resolvable:$true] %s809_s4 }
 0x2ff   :  { %663 = vrot.lane.b32.xlu2 %v641_v47, %s1064_s15  ;;  %653 = vrot.lane.b32.xlu1 %v641_v47, %s1054_s23  ;;  %s811_s15 = sshll.u32 %s1359_s11, 4  ;;  %s812_s15 = int_to_ptr.hbm [resolvable:$true] %s811_s15 }
 0x300   :  { %658 = vrot.lane.b32.xlu0 %v641_v47, %s1062_s13 }
 0x307   :  { %668 = vrot.lane.b32.xlu1 %v641_v47, %s1065_s30 }
 0x308   :  { %622 = vrot.lane.b32.xlu0 %v583_v45, %s1065_s30 }
 0x341   :  { %v598_v55 = vpop.permute.xlu2 %597 }
 0x349   :  { %v613_v59 = vpop.permute.xlu2 %612 }
 0x351   :  { %v649_v0 = vpop.permute.xlu2 %648 }
 0x359   :  { %v593_v56 = vpop.permute.xlu1 %592  ;;  %v664_v5 = vpop.permute.xlu2 %663 }
 0x35a   :  { %v588_v57 = vpop.permute.xlu0 %587 }
 0x35b   :  { %591 = vst.msk [vmem:[#allocation3] sm:$0x1] %vm590_vm2, %v588_v57  ;;  %vm671_vm2 = vcmask 584194  }
 0x35c   :  { %596 = vst.msk [vmem:[#allocation3] sm:$0x1] %vm595_vm3, %v593_v56  ;;  %vm625_vm3 = vcmask 586244  }
 0x35d   :  { %630 = vst.msk [vmem:[#allocation3 - $0x5] sm:$0x40] %vm629_vm4, %v588_v57  ;;  %vm715_vm4 = vcmask 588800  }
 0x35e   :  { %601 = vst.msk [vmem:[#allocation3 - $0x2] sm:$0x4] %vm600_vm5, %v598_v55 }
 0x35f   :  { %632 = vst.msk [vmem:[#allocation3 - $0x5] sm:$0x40] %vm631_vm7, %v593_v56 }
 0x361   :  { %v603_v60 = vpop.permute.xlu1 %602 }
 0x362   :  { %606 = vst.msk [vmem:[#allocation3 - $0x2] sm:$0x4] %vm605_vm9, %v603_v60  ;;  %v608_v61 = vpop.permute.xlu0 %607 }
 0x363   :  { %611 = vst.msk [vmem:[#allocation3 - $0x2] sm:$0x4] %vm610_vm10, %v608_v61 }
 0x364   :  { %616 = vst.msk [vmem:[#allocation3 - $0x4] sm:$0x10] %vm615_vm11, %v613_v59 }
 0x369   :  { %v618_v1 = vpop.permute.xlu1 %617 }
 0x36a   :  { %621 = vst.msk [vmem:[#allocation3 - $0x4] sm:$0x10] %vm620_vm12, %v618_v1  ;;  %v644_v2 = vpop.permute.xlu0 %643 }
 0x36b   :  { %647 = vst.msk [vmem:[#allocation3 + $0x1] sm:$0x1] %vm646_vm13, %v644_v2 }
 0x36c   :  { %652 = vst.msk [vmem:[#allocation3 + $0x1] sm:$0x1] %vm651_vm14, %v649_v0 }
 0x371   :  { %v654_v3 = vpop.permute.xlu1 %653 }
 0x372   :  { %657 = vst.msk [vmem:[#allocation3 + $0x1] sm:$0x1] %vm656_vm15, %v654_v3  ;;  %v659_v4 = vpop.permute.xlu0 %658 }
 0x373   :  { %662 = vst.msk [vmem:[#allocation3 - $0x1] sm:$0x4] %vm661_vm0, %v659_v4 }
 0x374   :  { %667 = vst.msk [vmem:[#allocation3 - $0x1] sm:$0x4] %vm666_vm1, %v664_v5 }
 0x379   :  { %v669_v6 = vpop.permute.xlu1 %668 }
 0x37a   :  { %672 = vst.msk [vmem:[#allocation3 - $0x1] sm:$0x4] %vm671_vm2, %v669_v6  ;;  %v623_v7 = vpop.permute.xlu0 %622 }
 0x37b   :  { %626 = vst.msk [vmem:[#allocation3 - $0x4] sm:$0x10] %vm625_vm3, %v623_v7 }
 0x382   :  { %v673_v8 = vld [vmem:[#allocation3] sm:$0x3] }
 0x383   :  { %v674_v9 = vpack.c.bf16 %v673_v8, %v673_v8 }
 0x385   :  { %940 = vmatmul.msk.bf16.vlgmr.msrb.gmra.mxu0 %vm715_vm4, %v674_v9 }
 0x402   :  { %v731_v12 = vpop.f32.mrf.mxu0 }
 0x403   :  { %v732_v13 = vadd.f32 %v997_v11, %v731_v12 }
 0x405   :  { %v735_v14 = vmax.f32 %v732_v13, 0.0 }
 0x407   :  { %v736_v15 = vpack.c.bf16 %v735_v14, %v735_v14 }
 0x409   :  { %949 = vmatmul.msk.bf16.vlgmr.msrb.gmra.mxu1 %vm329_vm8, %v736_v15 }
 0x40a   :  { %v733_v16 = vpop.f32.mrf.mxu0 }
 0x486   :  { %v769_v18 = vpop.f32.mrf.mxu1 }
 0x487   :  { %v770_v19 = vadd.f32 %v998_v17, %v769_v18 }
 0x489   :  { %v773_v20 = vmax.f32 %v770_v19, 0.0 }
 0x48b   :  { %v774_v21 = vpack.c.bf16 %v773_v20, %v773_v20 }
 0x48d   :  { %954 = vmatmul.msk.bf16.vlgmr.msrb.gmra.mxu2 %vm325_vm6, %v774_v21 }
 0x48e   :  { %v771_v22 = vpop.f32.mrf.mxu1 }
 0x510   :  { %v799_v24 = vpop.f32.mrf.mxu2 }
 0x511   :  { %v800_v25 = vadd.f32 %v999_v23, %v799_v24 }
 0x513   :  { %803 = vst [vmem:[#allocation7] sm:$0x3] %v800_v25 }
 0x514   :  { %814 = dma.vmem_to_hbm [thread:$0]  %s810_s4, 32, %s812_s15, [#allocation6]  }
 0x518   :  { %v801_v26 = vpop.f32.mrf.mxu2 }
 0x519   :  { %1050 = dma.done.wait [#allocation6], 32  }
 0x51a   :  { %1051 = vsyncadd [#allocation6], 4294967264 }
 0x51b   :  { %819 = vsyncpa [#allocation5], 1 }
 0x51c   :  { %820 = vsyncpa [#allocation6], 1 }

</bundles_post_ra>
